<compile_context>
chip_gen: v7x
topology: tpu7x:2x2x1
jax: 0.10.0
libtpu: 0.0.40
codegen_flags: <defaults>
</compile_context>

<pallas_src>
import functools
from collections import OrderedDict

import numpy as np

import jax
import jax.numpy as jnp
from jax import lax
from jax.experimental import pallas as pl
from jax.experimental.pallas import tpu as pltpu


def _round_up(x, m):
    return (x + m - 1) // m * m


# ---------------------------------------------------------------------------
# Fused kernel: the whole _forward for ONE batch element per grid step.
# ---------------------------------------------------------------------------
def _accsegnet_fused_kernel(xS_ref, xT_ref, wT_ref, wS_ref, wSeg_ref, m_ref,
                            o_ST, o_STS, o_SS, o_STM, o_TS, o_TST, o_TT, o_TM,
                            act_ref, patch_ref, *, W, cin):
    """
    xS_ref/xT_ref : (1, Cin, H*W)        lane-dense activations (one batch elt)
    w*_ref        : (Cout, K)            packed 3x3 weights + folded bias
    m_ref         : (9, 1, H*W)          per-tap halo-validity masks
    o_*           : (1, Cout, H*W)       lane-dense outputs
    act_ref       : (CP, H*W)            channel-padded staging slab (CP=round_up(Cin,8))
    patch_ref     : (K, 4*H*W)           im2col scratch; column slots:
                                         0 = x_ST, 1 = x_T, 2 = x_S, 3 = x_TS
    """
    HW = xS_ref.shape[-1]
    CP = act_ref.shape[0]                      # tap row stride (8-aligned)
    K = patch_ref.shape[0]                     # 9*CP + 8

    # Nine (1, H*W) mask rows, loaded once per step.
    ms = [m_ref[k] for k in range(9)]

    # Bias / pad row-group (rows 9*CP .. K-1): row 0 of the group is all-ones
    # (realizes the folded bias), the rest zero.  Written every step because a
    # "parallel" grid step may land on a core with uninitialized scratch.
    grp = lax.broadcasted_iota(jnp.int32, (K - 9 * CP, patch_ref.shape[1]), 0)
    patch_ref[9 * CP:K, :] = (grp == 0).astype(jnp.float32)

    # Channel-padded staging buffer: rows cin..CP-1 stay zero, so every tap
    # store below is a full (CP, HW) aligned store that also clears the gap
    # rows of the patch — no global zero-fill needed.
    act_ref[...] = jnp.zeros((CP, HW), jnp.float32)

    def build_patch(img, slot):
        """img: (cin, HW) f32 value -> im2col columns [slot*HW, (slot+1)*HW)."""
        act_ref[0:cin, :] = img
        imgp = act_ref[...]                    # (CP, HW); rows >= cin are zero
        c0 = slot * HW
        for dy in range(3):
            for dx in range(3):
                t = dy * 3 + dx
                off = (dy - 1) * W + (dx - 1)
                if off == 0:
                    tap = imgp                 # centre tap: always valid
                else:
                    tap = pltpu.roll(imgp, (-off) % HW, 1) * ms[t]
                patch_ref[t * CP:(t + 1) * CP, c0:c0 + HW] = tap

    # ---- build patches for the two network inputs --------------------------
    build_patch(xT_ref[0].astype(jnp.float32), 1)      # slot 1 = x_T
    build_patch(xS_ref[0].astype(jnp.float32), 2)      # slot 2 = x_S

    # ---- stage 1: generator_T on [x_T | x_S]  (one MXU contraction) --------
    gT1 = jnp.tanh(jnp.dot(wT_ref[...], patch_ref[:, HW:3 * HW],
                           preferred_element_type=jnp.float32))
    x_TT, x_ST = gT1[:, :HW], gT1[:, HW:]
    o_TT[0] = x_TT.astype(o_TT.dtype)
    o_ST[0] = x_ST.astype(o_ST.dtype)

    build_patch(x_ST, 0)                                # slot 0 = x_ST

    # ---- stage 2: generator_S on [x_ST | x_T | x_S] -------------------------
    gS1 = jnp.tanh(jnp.dot(wS_ref[...], patch_ref[:, :3 * HW],
                           preferred_element_type=jnp.float32))
    x_STS, x_TS, x_SS = gS1[:, :HW], gS1[:, HW:2 * HW], gS1[:, 2 * HW:]
    o_STS[0] = x_STS.astype(o_STS.dtype)
    o_TS[0] = x_TS.astype(o_TS.dtype)
    o_SS[0] = x_SS.astype(o_SS.dtype)

    build_patch(x_TS, 3)                                # slot 3 = x_TS

    # ---- stage 3: generator_T on x_TS ---------------------------------------
    gT2 = jnp.tanh(jnp.dot(wT_ref[...], patch_ref[:, 3 * HW:4 * HW],
                           preferred_element_type=jnp.float32))
    o_TST[0] = gT2.astype(o_TST.dtype)

    # ---- stage 4: segmentor on [x_ST | x_T] (patches reused, no tanh) -------
    sg = jnp.dot(wSeg_ref[...], patch_ref[:, :2 * HW],
                 preferred_element_type=jnp.float32)
    o_STM[0] = sg[:, :HW].astype(o_STM.dtype)
    o_TM[0] = sg[:, HW:].astype(o_TM.dtype)


# ---------------------------------------------------------------------------
# Wrapper: one pallas_call for the whole forward pass.
# ---------------------------------------------------------------------------
def accsegnet_forward(x_S, x_T, params):
    B, C, H, Wd = x_S.shape
    HW = H * Wd
    wS, wT, wSeg = params["wS"], params["wT"], params["wSeg"]
    masks = params["masks"]
    CG = int(wS.shape[0])                    # generator out-channels (== C)
    NC = int(wSeg.shape[0])                  # segmentor out-channels
    K = int(wS.shape[1])
    CP = _round_up(C, 8)

    xS_flat = x_S.reshape(B, C, HW)          # free metadata reshapes
    xT_flat = x_T.reshape(B, C, HW)

    kernel = functools.partial(_accsegnet_fused_kernel, W=Wd, cin=C)

    out_channels = (CG, CG, CG, NC, CG, CG, CG, NC)   # ST,STS,SS,STM,TS,TST,TT,TM
    out_shape = tuple(jax.ShapeDtypeStruct((B, co, HW), x_S.dtype)
                      for co in out_channels)
    out_specs = tuple(pl.BlockSpec((1, co, HW), lambda b: (b, 0, 0))
                      for co in out_channels)

    flops_per_b = 2 * K * HW * (6 * CG + 2 * NC)
    outs = pl.pallas_call(
        kernel,
        out_shape=out_shape,
        grid=(B,),
        in_specs=[
            pl.BlockSpec((1, C, HW), lambda b: (b, 0, 0)),     # x_S
            pl.BlockSpec((1, C, HW), lambda b: (b, 0, 0)),     # x_T
            pl.BlockSpec((CG, K), lambda b: (0, 0)),           # wT
            pl.BlockSpec((CG, K), lambda b: (0, 0)),           # wS
            pl.BlockSpec((NC, K), lambda b: (0, 0)),           # wSeg
            pl.BlockSpec((9, 1, HW), lambda b: (0, 0, 0)),     # masks
        ],
        out_specs=out_specs,
        scratch_shapes=[
            pltpu.VMEM((CP, HW), jnp.float32),                 # act staging
            pltpu.VMEM((K, 4 * HW), jnp.float32),              # im2col patch
        ],
        compiler_params=pltpu.CompilerParams(
            dimension_semantics=("parallel",),                 # v7x: 2 TCs
        ),
        cost_estimate=pl.CostEstimate(
            flops=B * flops_per_b,
            transcendentals=B * CG * 6 * HW,
            bytes_accessed=4 * (2 * B * C * HW + (2 * CG + NC) * K + 9 * HW
                                + B * (6 * CG + 2 * NC) * HW),
        ),
    )(xS_flat, xT_flat, wT, wS, wSeg, masks)

    x_ST, x_STS, x_SS, x_STM, x_TS, x_TST, x_TT, x_TM = (
        o.reshape(B, co, H, Wd) for o, co in zip(outs, out_channels))

    return OrderedDict(
        (
            ("x_S", x_S),
            ("x_ST", x_ST),
            ("x_STS", x_STS),
            ("x_SS", x_SS),
            ("x_STM", x_STM),
            ("x_T", x_T),
            ("x_TS", x_TS),
            ("x_TST", x_TST),
            ("x_TT", x_TT),
            ("x_TM", x_TM),
        )
    )


# ---------------------------------------------------------------------------
# Parameter packing / mask construction (plain-JAX / numpy glue)
# ---------------------------------------------------------------------------
def _make_conv_params(key, cin, cout):
    kw, kb = jax.random.split(key)
    fan_in = cin * 9
    w_t = jax.random.normal(kw, (cout, cin, 3, 3), jnp.float32) / jnp.sqrt(fan_in)
    b_t = jax.random.normal(kb, (cout,), jnp.float32) * 0.01
    return w_t, b_t                                  # torch layout (O, I, kh, kw)


def _pack_weights(w_t, b_t):
    """(Cout,Cin,3,3)+(Cout,) -> (Cout, K): tap t -> cols [t*CP, t*CP+Cin),
    col 9*CP = bias, everything else zero (matches the im2col row layout)."""
    cout, cin = int(w_t.shape[0]), int(w_t.shape[1])
    cp = _round_up(cin, 8)
    k = 9 * cp + 8
    w_r = jnp.transpose(w_t, (2, 3, 0, 1))           # (kh, kw, Cout, Cin)
    w_mat = jnp.zeros((cout, k), jnp.float32)
    for dy in range(3):
        for dx in range(3):
            t = dy * 3 + dx
            w_mat = w_mat.at[:, t * cp:t * cp + cin].set(w_r[dy, dx])
    w_mat = w_mat.at[:, 9 * cp].set(b_t)             # bias column
    return w_mat


def _make_tap_masks(H, W):
    """(9, 1, H*W) f32 validity masks for the 3x3 halo (replaces jnp.pad)."""
    hh, ww = np.meshgrid(np.arange(H), np.arange(W), indexing="ij")
    masks = np.zeros((9, 1, H * W), np.float32)
    for dy in range(3):
        for dx in range(3):
            k = dy * 3 + dx
            valid = ((hh + dy - 1 >= 0) & (hh + dy - 1 < H) &
                     (ww + dx - 1 >= 0) & (ww + dx - 1 < W))
            masks[k, 0] = valid.reshape(-1).astype(np.float32)
    return jnp.asarray(masks)


# ---------------------------------------------------------------------------
# Pure-JAX reference (for numerics validation)
# ---------------------------------------------------------------------------
def _ref_conv3x3(x, w_t, b_t, apply_tanh):
    out = lax.conv_general_dilated(
        x, w_t, window_strides=(1, 1), padding="SAME",
        dimension_numbers=("NCHW", "OIHW", "NCHW"),
        precision=lax.Precision.HIGHEST)
    out = out + b_t[None, :, None, None]
    return jnp.tanh(out) if apply_tanh else out


def _ref_forward(x_S, x_T, raw):
    gS = lambda x: _ref_conv3x3(x, raw["wS"], raw["bS"], True)
    gT = lambda x: _ref_conv3x3(x, raw["wT"], raw["bT"], True)
    sg = lambda x: _ref_conv3x3(x, raw["wSeg"], raw["bSeg"], False)
    x_ST = gT(x_S)
    x_STS = gS(x_ST)
    x_SS = gS(x_S)
    x_TS = gS(x_T)
    x_TST = gT(x_TS)
    x_TT = gT(x_T)
    x_STM = sg(x_ST)
    x_TM = sg(x_T)
    return OrderedDict(
        (("x_S", x_S), ("x_ST", x_ST), ("x_STS", x_STS), ("x_SS", x_SS),
         ("x_STM", x_STM), ("x_T", x_T), ("x_TS", x_TS), ("x_TST", x_TST),
         ("x_TT", x_TT), ("x_TM", x_TM)))


if __name__ == "__main__":
    B, C, H, W = 2, 4, 16, 16
    NUM_CLASSES = 3

    key = jax.random.PRNGKey(0)
    k_xs, k_xt, k_gs, k_gt, k_seg = jax.random.split(key, 5)

    x_S = jax.random.normal(k_xs, (B, C, H, W), jnp.float32)
    x_T = jax.random.normal(k_xt, (B, C, H, W), jnp.float32)

    wS_t, bS = _make_conv_params(k_gs, C, C)                 # generator_S: C -> C
    wT_t, bT = _make_conv_params(k_gt, C, C)                 # generator_T: C -> C
    wSeg_t, bSeg = _make_conv_params(k_seg, C, NUM_CLASSES)  # segmentor

    params = dict(
        wS=_pack_weights(wS_t, bS),
        wT=_pack_weights(wT_t, bT),
        wSeg=_pack_weights(wSeg_t, bSeg),
        masks=_make_tap_masks(H, W),
    )

    forward = jax.jit(accsegnet_forward)
    visible = forward(x_S, x_T, params)
    jax.block_until_ready(list(visible.values()))

    # shape contract of the module
    assert visible["x_ST"].shape == (B, C, H, W)
    assert visible["x_STS"].shape == (B, C, H, W)
    assert visible["x_TST"].shape == (B, C, H, W)
    assert visible["x_STM"].shape == (B, NUM_CLASSES, H, W)
    assert visible["x_TM"].shape == (B, NUM_CLASSES, H, W)

    # numerics vs pure-JAX conv reference
    raw = dict(wS=wS_t, bS=bS, wT=wT_t, bT=bT, wSeg=wSeg_t, bSeg=bSeg)
    ref = _ref_forward(x_S, x_T, raw)
    for name in visible:
        assert bool(jnp.allclose(visible[name], ref[name],
                                 atol=1e-3, rtol=1e-3)), f"mismatch in {name}"

    print("KERNEL_OK")
</pallas_src>

<mosaic_0001>
module attributes {stable_mosaic.version = 11 : i64} {
  func.func @_accsegnet_fused_kernel(%arg0: i32, %arg1: memref<1x4x256xf32, #tpu.memory_space<vmem>>, %arg2: memref<1x4x256xf32, #tpu.memory_space<vmem>>, %arg3: memref<4x80xf32, #tpu.memory_space<vmem>>, %arg4: memref<4x80xf32, #tpu.memory_space<vmem>>, %arg5: memref<3x80xf32, #tpu.memory_space<vmem>>, %arg6: memref<9x1x256xf32, #tpu.memory_space<vmem>>, %arg7: memref<1x4x256xf32, #tpu.memory_space<vmem>>, %arg8: memref<1x4x256xf32, #tpu.memory_space<vmem>>, %arg9: memref<1x4x256xf32, #tpu.memory_space<vmem>>, %arg10: memref<1x3x256xf32, #tpu.memory_space<vmem>>, %arg11: memref<1x4x256xf32, #tpu.memory_space<vmem>>, %arg12: memref<1x4x256xf32, #tpu.memory_space<vmem>>, %arg13: memref<1x4x256xf32, #tpu.memory_space<vmem>>, %arg14: memref<1x3x256xf32, #tpu.memory_space<vmem>>, %arg15: memref<8x256xf32, #tpu.memory_space<vmem>>, %arg16: memref<80x1024xf32, #tpu.memory_space<vmem>>) attributes {dimension_semantics = [#tpu.dimension_semantics<parallel>], iteration_bounds = array<i64: 2>, scalar_prefetch = 0 : i64, scratch_operands = 2 : i64, tpu.core_type = #tpu.core_type<tc>, window_params = [{transform_indices = @transform_0, window_bounds = array<i64: 1, 4, 256>}, {transform_indices = @transform_1, window_bounds = array<i64: 1, 4, 256>}, {pipeline_mode = #tpu.pipeline_mode<synchronous>, transform_indices = @transform_2, window_bounds = array<i64: 4, 80>}, {pipeline_mode = #tpu.pipeline_mode<synchronous>, transform_indices = @transform_3, window_bounds = array<i64: 4, 80>}, {pipeline_mode = #tpu.pipeline_mode<synchronous>, transform_indices = @transform_4, window_bounds = array<i64: 3, 80>}, {pipeline_mode = #tpu.pipeline_mode<synchronous>, transform_indices = @transform_5, window_bounds = array<i64: 9, 1, 256>}, {transform_indices = @transform_6, window_bounds = array<i64: 1, 4, 256>}, {transform_indices = @transform_7, window_bounds = array<i64: 1, 4, 256>}, {transform_indices = @transform_8, window_bounds = array<i64: 1, 4, 256>}, {transform_indices = @transform_9, window_bounds = array<i64: 1, 3, 256>}, {transform_indices = @transform_10, window_bounds = array<i64: 1, 4, 256>}, {transform_indices = @transform_11, window_bounds = array<i64: 1, 4, 256>}, {transform_indices = @transform_12, window_bounds = array<i64: 1, 4, 256>}, {transform_indices = @transform_13, window_bounds = array<i64: 1, 3, 256>}]} {
    %c0 = arith.constant 0 : index
    %c0_0 = arith.constant 0 : index
    %c0_1 = arith.constant 0 : index
    %0 = vector.load %arg6[%c0, %c0_0, %c0_1] : memref<9x1x256xf32, #tpu.memory_space<vmem>>, vector<1x1x256xf32>
    %1 = vector.shape_cast %0 : vector<1x1x256xf32> to vector<1x256xf32>
    %c1 = arith.constant 1 : index
    %c0_2 = arith.constant 0 : index
    %c0_3 = arith.constant 0 : index
    %2 = vector.load %arg6[%c1, %c0_2, %c0_3] : memref<9x1x256xf32, #tpu.memory_space<vmem>>, vector<1x1x256xf32>
    %3 = vector.shape_cast %2 : vector<1x1x256xf32> to vector<1x256xf32>
    %c2 = arith.constant 2 : index
    %c0_4 = arith.constant 0 : index
    %c0_5 = arith.constant 0 : index
    %4 = vector.load %arg6[%c2, %c0_4, %c0_5] : memref<9x1x256xf32, #tpu.memory_space<vmem>>, vector<1x1x256xf32>
    %5 = vector.shape_cast %4 : vector<1x1x256xf32> to vector<1x256xf32>
    %c3 = arith.constant 3 : index
    %c0_6 = arith.constant 0 : index
    %c0_7 = arith.constant 0 : index
    %6 = vector.load %arg6[%c3, %c0_6, %c0_7] : memref<9x1x256xf32, #tpu.memory_space<vmem>>, vector<1x1x256xf32>
    %7 = vector.shape_cast %6 : vector<1x1x256xf32> to vector<1x256xf32>
    %c5 = arith.constant 5 : index
    %c0_8 = arith.constant 0 : index
    %c0_9 = arith.constant 0 : index
    %8 = vector.load %arg6[%c5, %c0_8, %c0_9] : memref<9x1x256xf32, #tpu.memory_space<vmem>>, vector<1x1x256xf32>
    %9 = vector.shape_cast %8 : vector<1x1x256xf32> to vector<1x256xf32>
    %c6 = arith.constant 6 : index
    %c0_10 = arith.constant 0 : index
    %c0_11 = arith.constant 0 : index
    %10 = vector.load %arg6[%c6, %c0_10, %c0_11] : memref<9x1x256xf32, #tpu.memory_space<vmem>>, vector<1x1x256xf32>
    %11 = vector.shape_cast %10 : vector<1x1x256xf32> to vector<1x256xf32>
    %c7 = arith.constant 7 : index
    %c0_12 = arith.constant 0 : index
    %c0_13 = arith.constant 0 : index
    %12 = vector.load %arg6[%c7, %c0_12, %c0_13] : memref<9x1x256xf32, #tpu.memory_space<vmem>>, vector<1x1x256xf32>
    %13 = vector.shape_cast %12 : vector<1x1x256xf32> to vector<1x256xf32>
    %c8 = arith.constant 8 : index
    %c0_14 = arith.constant 0 : index
    %c0_15 = arith.constant 0 : index
    %14 = vector.load %arg6[%c8, %c0_14, %c0_15] : memref<9x1x256xf32, #tpu.memory_space<vmem>>, vector<1x1x256xf32>
    %15 = vector.shape_cast %14 : vector<1x1x256xf32> to vector<1x256xf32>
    %16 = tpu.iota {dimensions = array<i32: 0>} : vector<8x1024xi32>
    %c0_i32 = arith.constant 0 : i32
    %17 = vector.broadcast %c0_i32 : i32 to vector<8x1024xi32>
    %18 = arith.cmpi eq, %16, %17 : vector<8x1024xi32>
    %19 = arith.extui %18 : vector<8x1024xi1> to vector<8x1024xi32>
    %20 = arith.sitofp %19 : vector<8x1024xi32> to vector<8x1024xf32>
    %c72 = arith.constant 72 : index
    %c0_16 = arith.constant 0 : index
    %21 = vector.load %arg16[%c72, %c0_16] : memref<80x1024xf32, #tpu.memory_space<vmem>>, vector<8x1024xf32>
    tpu.vector_store %arg16[%c72, %c0_16], %20 {strides = array<i32>} : memref<80x1024xf32, #tpu.memory_space<vmem>>, vector<8x1024xf32>,
    %cst = arith.constant 0.000000e+00 : f32
    %22 = vector.broadcast %cst : f32 to vector<8x256xf32>
    %c0_17 = arith.constant 0 : index
    %c0_18 = arith.constant 0 : index
    %23 = vector.load %arg15[%c0_17, %c0_18] : memref<8x256xf32, #tpu.memory_space<vmem>>, vector<8x256xf32>
    tpu.vector_store %arg15[%c0_17, %c0_18], %22 {strides = array<i32>} : memref<8x256xf32, #tpu.memory_space<vmem>>, vector<8x256xf32>,
    %c0_19 = arith.constant 0 : index
    %c0_20 = arith.constant 0 : index
    %c0_21 = arith.constant 0 : index
    %24 = vector.load %arg2[%c0_19, %c0_20, %c0_21] : memref<1x4x256xf32, #tpu.memory_space<vmem>>, vector<1x4x256xf32>
    %25 = vector.shape_cast %24 : vector<1x4x256xf32> to vector<4x256xf32>
    %c0_22 = arith.constant 0 : index
    %c0_23 = arith.constant 0 : index
    %26 = vector.load %arg15[%c0_22, %c0_23] : memref<8x256xf32, #tpu.memory_space<vmem>>, vector<4x256xf32>
    tpu.vector_store %arg15[%c0_22, %c0_23], %25 {strides = array<i32>} : memref<8x256xf32, #tpu.memory_space<vmem>>, vector<4x256xf32>,
    %c0_24 = arith.constant 0 : index
    %c0_25 = arith.constant 0 : index
    %27 = vector.load %arg15[%c0_24, %c0_25] : memref<8x256xf32, #tpu.memory_space<vmem>>, vector<8x256xf32>
    %c17_i32 = arith.constant 17 : i32
    %28 = tpu.dynamic_rotate %27 by %c17_i32 dim 1 : vector<8x256xf32>, i32 -> vector<8x256xf32>
    %29 = vector.broadcast %1 : vector<1x256xf32> to vector<8x256xf32>
    %30 = arith.mulf %28, %29 : vector<8x256xf32>
    %c0_26 = arith.constant 0 : index
    %c256 = arith.constant 256 : index
    %31 = vector.load %arg16[%c0_26, %c256] : memref<80x1024xf32, #tpu.memory_space<vmem>>, vector<8x256xf32>
    tpu.vector_store %arg16[%c0_26, %c256], %30 {strides = array<i32>} : memref<80x1024xf32, #tpu.memory_space<vmem>>, vector<8x256xf32>,
    %c16_i32 = arith.constant 16 : i32
    %32 = tpu.dynamic_rotate %27 by %c16_i32 dim 1 : vector<8x256xf32>, i32 -> vector<8x256xf32>
    %33 = vector.broadcast %3 : vector<1x256xf32> to vector<8x256xf32>
    %34 = arith.mulf %32, %33 : vector<8x256xf32>
    %c8_27 = arith.constant 8 : index
    %c256_28 = arith.constant 256 : index
    %35 = vector.load %arg16[%c8_27, %c256_28] : memref<80x1024xf32, #tpu.memory_space<vmem>>, vector<8x256xf32>
    tpu.vector_store %arg16[%c8_27, %c256_28], %34 {strides = array<i32>} : memref<80x1024xf32, #tpu.memory_space<vmem>>, vector<8x256xf32>,
    %c15_i32 = arith.constant 15 : i32
    %36 = tpu.dynamic_rotate %27 by %c15_i32 dim 1 : vector<8x256xf32>, i32 -> vector<8x256xf32>
    %37 = vector.broadcast %5 : vector<1x256xf32> to vector<8x256xf32>
    %38 = arith.mulf %36, %37 : vector<8x256xf32>
    %c16 = arith.constant 16 : index
    %c256_29 = arith.constant 256 : index
    %39 = vector.load %arg16[%c16, %c256_29] : memref<80x1024xf32, #tpu.memory_space<vmem>>, vector<8x256xf32>
    tpu.vector_store %arg16[%c16, %c256_29], %38 {strides = array<i32>} : memref<80x1024xf32, #tpu.memory_space<vmem>>, vector<8x256xf32>,
    %c1_i32 = arith.constant 1 : i32
    %40 = tpu.dynamic_rotate %27 by %c1_i32 dim 1 : vector<8x256xf32>, i32 -> vector<8x256xf32>
    %41 = vector.broadcast %7 : vector<1x256xf32> to vector<8x256xf32>
    %42 = arith.mulf %40, %41 : vector<8x256xf32>
    %c24 = arith.constant 24 : index
    %c256_30 = arith.constant 256 : index
    %43 = vector.load %arg16[%c24, %c256_30] : memref<80x1024xf32, #tpu.memory_space<vmem>>, vector<8x256xf32>
    tpu.vector_store %arg16[%c24, %c256_30], %42 {strides = array<i32>} : memref<80x1024xf32, #tpu.memory_space<vmem>>, vector<8x256xf32>,
    %c32 = arith.constant 32 : index
    %c256_31 = arith.constant 256 : index
    %44 = vector.load %arg16[%c32, %c256_31] : memref<80x1024xf32, #tpu.memory_space<vmem>>, vector<8x256xf32>
    tpu.vector_store %arg16[%c32, %c256_31], %27 {strides = array<i32>} : memref<80x1024xf32, #tpu.memory_space<vmem>>, vector<8x256xf32>,
    %c255_i32 = arith.constant 255 : i32
    %45 = tpu.dynamic_rotate %27 by %c255_i32 dim 1 : vector<8x256xf32>, i32 -> vector<8x256xf32>
    %46 = vector.broadcast %9 : vector<1x256xf32> to vector<8x256xf32>
    %47 = arith.mulf %45, %46 : vector<8x256xf32>
    %c40 = arith.constant 40 : index
    %c256_32 = arith.constant 256 : index
    %48 = vector.load %arg16[%c40, %c256_32] : memref<80x1024xf32, #tpu.memory_space<vmem>>, vector<8x256xf32>
    tpu.vector_store %arg16[%c40, %c256_32], %47 {strides = array<i32>} : memref<80x1024xf32, #tpu.memory_space<vmem>>, vector<8x256xf32>,
    %c241_i32 = arith.constant 241 : i32
    %49 = tpu.dynamic_rotate %27 by %c241_i32 dim 1 : vector<8x256xf32>, i32 -> vector<8x256xf32>
    %50 = vector.broadcast %11 : vector<1x256xf32> to vector<8x256xf32>
    %51 = arith.mulf %49, %50 : vector<8x256xf32>
    %c48 = arith.constant 48 : index
    %c256_33 = arith.constant 256 : index
    %52 = vector.load %arg16[%c48, %c256_33] : memref<80x1024xf32, #tpu.memory_space<vmem>>, vector<8x256xf32>
    tpu.vector_store %arg16[%c48, %c256_33], %51 {strides = array<i32>} : memref<80x1024xf32, #tpu.memory_space<vmem>>, vector<8x256xf32>,
    %c240_i32 = arith.constant 240 : i32
    %53 = tpu.dynamic_rotate %27 by %c240_i32 dim 1 : vector<8x256xf32>, i32 -> vector<8x256xf32>
    %54 = vector.broadcast %13 : vector<1x256xf32> to vector<8x256xf32>
    %55 = arith.mulf %53, %54 : vector<8x256xf32>
    %c56 = arith.constant 56 : index
    %c256_34 = arith.constant 256 : index
    %56 = vector.load %arg16[%c56, %c256_34] : memref<80x1024xf32, #tpu.memory_space<vmem>>, vector<8x256xf32>
    tpu.vector_store %arg16[%c56, %c256_34], %55 {strides = array<i32>} : memref<80x1024xf32, #tpu.memory_space<vmem>>, vector<8x256xf32>,
    %c239_i32 = arith.constant 239 : i32
    %57 = tpu.dynamic_rotate %27 by %c239_i32 dim 1 : vector<8x256xf32>, i32 -> vector<8x256xf32>
    %58 = vector.broadcast %15 : vector<1x256xf32> to vector<8x256xf32>
    %59 = arith.mulf %57, %58 : vector<8x256xf32>
    %c64 = arith.constant 64 : index
    %c256_35 = arith.constant 256 : index
    %60 = vector.load %arg16[%c64, %c256_35] : memref<80x1024xf32, #tpu.memory_space<vmem>>, vector<8x256xf32>
    tpu.vector_store %arg16[%c64, %c256_35], %59 {strides = array<i32>} : memref<80x1024xf32, #tpu.memory_space<vmem>>, vector<8x256xf32>,
    %c0_36 = arith.constant 0 : index
    %c0_37 = arith.constant 0 : index
    %c0_38 = arith.constant 0 : index
    %61 = vector.load %arg1[%c0_36, %c0_37, %c0_38] : memref<1x4x256xf32, #tpu.memory_space<vmem>>, vector<1x4x256xf32>
    %62 = vector.shape_cast %61 : vector<1x4x256xf32> to vector<4x256xf32>
    %c0_39 = arith.constant 0 : index
    %c0_40 = arith.constant 0 : index
    %63 = vector.load %arg15[%c0_39, %c0_40] : memref<8x256xf32, #tpu.memory_space<vmem>>, vector<4x256xf32>
    tpu.vector_store %arg15[%c0_39, %c0_40], %62 {strides = array<i32>} : memref<8x256xf32, #tpu.memory_space<vmem>>, vector<4x256xf32>,
    %c0_41 = arith.constant 0 : index
    %c0_42 = arith.constant 0 : index
    %64 = vector.load %arg15[%c0_41, %c0_42] : memref<8x256xf32, #tpu.memory_space<vmem>>, vector<8x256xf32>
    %c17_i32_43 = arith.constant 17 : i32
    %65 = tpu.dynamic_rotate %64 by %c17_i32_43 dim 1 : vector<8x256xf32>, i32 -> vector<8x256xf32>
    %66 = vector.broadcast %1 : vector<1x256xf32> to vector<8x256xf32>
    %67 = arith.mulf %65, %66 : vector<8x256xf32>
    %c0_44 = arith.constant 0 : index
    %c512 = arith.constant 512 : index
    %68 = vector.load %arg16[%c0_44, %c512] : memref<80x1024xf32, #tpu.memory_space<vmem>>, vector<8x256xf32>
    tpu.vector_store %arg16[%c0_44, %c512], %67 {strides = array<i32>} : memref<80x1024xf32, #tpu.memory_space<vmem>>, vector<8x256xf32>,
    %c16_i32_45 = arith.constant 16 : i32
    %69 = tpu.dynamic_rotate %64 by %c16_i32_45 dim 1 : vector<8x256xf32>, i32 -> vector<8x256xf32>
    %70 = vector.broadcast %3 : vector<1x256xf32> to vector<8x256xf32>
    %71 = arith.mulf %69, %70 : vector<8x256xf32>
    %c8_46 = arith.constant 8 : index
    %c512_47 = arith.constant 512 : index
    %72 = vector.load %arg16[%c8_46, %c512_47] : memref<80x1024xf32, #tpu.memory_space<vmem>>, vector<8x256xf32>
    tpu.vector_store %arg16[%c8_46, %c512_47], %71 {strides = array<i32>} : memref<80x1024xf32, #tpu.memory_space<vmem>>, vector<8x256xf32>,
    %c15_i32_48 = arith.constant 15 : i32
    %73 = tpu.dynamic_rotate %64 by %c15_i32_48 dim 1 : vector<8x256xf32>, i32 -> vector<8x256xf32>
    %74 = vector.broadcast %5 : vector<1x256xf32> to vector<8x256xf32>
    %75 = arith.mulf %73, %74 : vector<8x256xf32>
    %c16_49 = arith.constant 16 : index
    %c512_50 = arith.constant 512 : index
    %76 = vector.load %arg16[%c16_49, %c512_50] : memref<80x1024xf32, #tpu.memory_space<vmem>>, vector<8x256xf32>
    tpu.vector_store %arg16[%c16_49, %c512_50], %75 {strides = array<i32>} : memref<80x1024xf32, #tpu.memory_space<vmem>>, vector<8x256xf32>,
    %c1_i32_51 = arith.constant 1 : i32
    %77 = tpu.dynamic_rotate %64 by %c1_i32_51 dim 1 : vector<8x256xf32>, i32 -> vector<8x256xf32>
    %78 = vector.broadcast %7 : vector<1x256xf32> to vector<8x256xf32>
    %79 = arith.mulf %77, %78 : vector<8x256xf32>
    %c24_52 = arith.constant 24 : index
    %c512_53 = arith.constant 512 : index
    %80 = vector.load %arg16[%c24_52, %c512_53] : memref<80x1024xf32, #tpu.memory_space<vmem>>, vector<8x256xf32>
    tpu.vector_store %arg16[%c24_52, %c512_53], %79 {strides = array<i32>} : memref<80x1024xf32, #tpu.memory_space<vmem>>, vector<8x256xf32>,
    %c32_54 = arith.constant 32 : index
    %c512_55 = arith.constant 512 : index
    %81 = vector.load %arg16[%c32_54, %c512_55] : memref<80x1024xf32, #tpu.memory_space<vmem>>, vector<8x256xf32>
    tpu.vector_store %arg16[%c32_54, %c512_55], %64 {strides = array<i32>} : memref<80x1024xf32, #tpu.memory_space<vmem>>, vector<8x256xf32>,
    %c255_i32_56 = arith.constant 255 : i32
    %82 = tpu.dynamic_rotate %64 by %c255_i32_56 dim 1 : vector<8x256xf32>, i32 -> vector<8x256xf32>
    %83 = vector.broadcast %9 : vector<1x256xf32> to vector<8x256xf32>
    %84 = arith.mulf %82, %83 : vector<8x256xf32>
    %c40_57 = arith.constant 40 : index
    %c512_58 = arith.constant 512 : index
    %85 = vector.load %arg16[%c40_57, %c512_58] : memref<80x1024xf32, #tpu.memory_space<vmem>>, vector<8x256xf32>
    tpu.vector_store %arg16[%c40_57, %c512_58], %84 {strides = array<i32>} : memref<80x1024xf32, #tpu.memory_space<vmem>>, vector<8x256xf32>,
    %c241_i32_59 = arith.constant 241 : i32
    %86 = tpu.dynamic_rotate %64 by %c241_i32_59 dim 1 : vector<8x256xf32>, i32 -> vector<8x256xf32>
    %87 = vector.broadcast %11 : vector<1x256xf32> to vector<8x256xf32>
    %88 = arith.mulf %86, %87 : vector<8x256xf32>
    %c48_60 = arith.constant 48 : index
    %c512_61 = arith.constant 512 : index
    %89 = vector.load %arg16[%c48_60, %c512_61] : memref<80x1024xf32, #tpu.memory_space<vmem>>, vector<8x256xf32>
    tpu.vector_store %arg16[%c48_60, %c512_61], %88 {strides = array<i32>} : memref<80x1024xf32, #tpu.memory_space<vmem>>, vector<8x256xf32>,
    %c240_i32_62 = arith.constant 240 : i32
    %90 = tpu.dynamic_rotate %64 by %c240_i32_62 dim 1 : vector<8x256xf32>, i32 -> vector<8x256xf32>
    %91 = vector.broadcast %13 : vector<1x256xf32> to vector<8x256xf32>
    %92 = arith.mulf %90, %91 : vector<8x256xf32>
    %c56_63 = arith.constant 56 : index
    %c512_64 = arith.constant 512 : index
    %93 = vector.load %arg16[%c56_63, %c512_64] : memref<80x1024xf32, #tpu.memory_space<vmem>>, vector<8x256xf32>
    tpu.vector_store %arg16[%c56_63, %c512_64], %92 {strides = array<i32>} : memref<80x1024xf32, #tpu.memory_space<vmem>>, vector<8x256xf32>,
    %c239_i32_65 = arith.constant 239 : i32
    %94 = tpu.dynamic_rotate %64 by %c239_i32_65 dim 1 : vector<8x256xf32>, i32 -> vector<8x256xf32>
    %95 = vector.broadcast %15 : vector<1x256xf32> to vector<8x256xf32>
    %96 = arith.mulf %94, %95 : vector<8x256xf32>
    %c64_66 = arith.constant 64 : index
    %c512_67 = arith.constant 512 : index
    %97 = vector.load %arg16[%c64_66, %c512_67] : memref<80x1024xf32, #tpu.memory_space<vmem>>, vector<8x256xf32>
    tpu.vector_store %arg16[%c64_66, %c512_67], %96 {strides = array<i32>} : memref<80x1024xf32, #tpu.memory_space<vmem>>, vector<8x256xf32>,
    %c0_68 = arith.constant 0 : index
    %c0_69 = arith.constant 0 : index
    %98 = vector.load %arg3[%c0_68, %c0_69] : memref<4x80xf32, #tpu.memory_space<vmem>>, vector<4x80xf32>
    %c0_70 = arith.constant 0 : index
    %c256_71 = arith.constant 256 : index
    %99 = vector.load %arg16[%c0_70, %c256_71] : memref<80x1024xf32, #tpu.memory_space<vmem>>, vector<80x512xf32>
    %cst_72 = arith.constant dense<0.000000e+00> : vector<4x512xf32>
    %100 = tpu.matmul %98, %99, %cst_72 {dimension_numbers = #tpu.dot_dimension_numbers<[1], [0], [0], [1], [0, 0, 1, 1], [], []>} : vector<4x80xf32>, vector<80x512xf32>, vector<4x512xf32> -> vector<4x512xf32>
    %101 = math.tanh %100 : vector<4x512xf32>
    %102 = vector.extract_strided_slice %101 {offsets = [0, 0], sizes = [4, 256], strides = [1, 1]} : vector<4x512xf32> to vector<4x256xf32>
    %103 = vector.extract_strided_slice %101 {offsets = [0, 256], sizes = [4, 256], strides = [1, 1]} : vector<4x512xf32> to vector<4x256xf32>
    %c0_73 = arith.constant 0 : index
    %c0_74 = arith.constant 0 : index
    %c0_75 = arith.constant 0 : index
    %104 = vector.load %arg13[%c0_73, %c0_74, %c0_75] : memref<1x4x256xf32, #tpu.memory_space<vmem>>, vector<1x4x256xf32>
    %105 = vector.shape_cast %104 : vector<1x4x256xf32> to vector<4x256xf32>
    %106 = vector.shape_cast %102 : vector<4x256xf32> to vector<1x4x256xf32>
    tpu.vector_store %arg13[%c0_73, %c0_74, %c0_75], %106 {strides = array<i32>} : memref<1x4x256xf32, #tpu.memory_space<vmem>>, vector<1x4x256xf32>,
    %c0_76 = arith.constant 0 : index
    %c0_77 = arith.constant 0 : index
    %c0_78 = arith.constant 0 : index
    %107 = vector.load %arg7[%c0_76, %c0_77, %c0_78] : memref<1x4x256xf32, #tpu.memory_space<vmem>>, vector<1x4x256xf32>
    %108 = vector.shape_cast %107 : vector<1x4x256xf32> to vector<4x256xf32>
    %109 = vector.shape_cast %103 : vector<4x256xf32> to vector<1x4x256xf32>
    tpu.vector_store %arg7[%c0_76, %c0_77, %c0_78], %109 {strides = array<i32>} : memref<1x4x256xf32, #tpu.memory_space<vmem>>, vector<1x4x256xf32>,
    %c0_79 = arith.constant 0 : index
    %c0_80 = arith.constant 0 : index
    %110 = vector.load %arg15[%c0_79, %c0_80] : memref<8x256xf32, #tpu.memory_space<vmem>>, vector<4x256xf32>
    tpu.vector_store %arg15[%c0_79, %c0_80], %103 {strides = array<i32>} : memref<8x256xf32, #tpu.memory_space<vmem>>, vector<4x256xf32>,
    %c0_81 = arith.constant 0 : index
    %c0_82 = arith.constant 0 : index
    %111 = vector.load %arg15[%c0_81, %c0_82] : memref<8x256xf32, #tpu.memory_space<vmem>>, vector<8x256xf32>
    %c17_i32_83 = arith.constant 17 : i32
    %112 = tpu.dynamic_rotate %111 by %c17_i32_83 dim 1 : vector<8x256xf32>, i32 -> vector<8x256xf32>
    %113 = vector.broadcast %1 : vector<1x256xf32> to vector<8x256xf32>
    %114 = arith.mulf %112, %113 : vector<8x256xf32>
    %c0_84 = arith.constant 0 : index
    %c0_85 = arith.constant 0 : index
    %115 = vector.load %arg16[%c0_84, %c0_85] : memref<80x1024xf32, #tpu.memory_space<vmem>>, vector<8x256xf32>
    tpu.vector_store %arg16[%c0_84, %c0_85], %114 {strides = array<i32>} : memref<80x1024xf32, #tpu.memory_space<vmem>>, vector<8x256xf32>,
    %c16_i32_86 = arith.constant 16 : i32
    %116 = tpu.dynamic_rotate %111 by %c16_i32_86 dim 1 : vector<8x256xf32>, i32 -> vector<8x256xf32>
    %117 = vector.broadcast %3 : vector<1x256xf32> to vector<8x256xf32>
    %118 = arith.mulf %116, %117 : vector<8x256xf32>
    %c8_87 = arith.constant 8 : index
    %c0_88 = arith.constant 0 : index
    %119 = vector.load %arg16[%c8_87, %c0_88] : memref<80x1024xf32, #tpu.memory_space<vmem>>, vector<8x256xf32>
    tpu.vector_store %arg16[%c8_87, %c0_88], %118 {strides = array<i32>} : memref<80x1024xf32, #tpu.memory_space<vmem>>, vector<8x256xf32>,
    %c15_i32_89 = arith.constant 15 : i32
    %120 = tpu.dynamic_rotate %111 by %c15_i32_89 dim 1 : vector<8x256xf32>, i32 -> vector<8x256xf32>
    %121 = vector.broadcast %5 : vector<1x256xf32> to vector<8x256xf32>
    %122 = arith.mulf %120, %121 : vector<8x256xf32>
    %c16_90 = arith.constant 16 : index
    %c0_91 = arith.constant 0 : index
    %123 = vector.load %arg16[%c16_90, %c0_91] : memref<80x1024xf32, #tpu.memory_space<vmem>>, vector<8x256xf32>
    tpu.vector_store %arg16[%c16_90, %c0_91], %122 {strides = array<i32>} : memref<80x1024xf32, #tpu.memory_space<vmem>>, vector<8x256xf32>,
    %c1_i32_92 = arith.constant 1 : i32
    %124 = tpu.dynamic_rotate %111 by %c1_i32_92 dim 1 : vector<8x256xf32>, i32 -> vector<8x256xf32>
    %125 = vector.broadcast %7 : vector<1x256xf32> to vector<8x256xf32>
    %126 = arith.mulf %124, %125 : vector<8x256xf32>
    %c24_93 = arith.constant 24 : index
    %c0_94 = arith.constant 0 : index
    %127 = vector.load %arg16[%c24_93, %c0_94] : memref<80x1024xf32, #tpu.memory_space<vmem>>, vector<8x256xf32>
    tpu.vector_store %arg16[%c24_93, %c0_94], %126 {strides = array<i32>} : memref<80x1024xf32, #tpu.memory_space<vmem>>, vector<8x256xf32>,
    %c32_95 = arith.constant 32 : index
    %c0_96 = arith.constant 0 : index
    %128 = vector.load %arg16[%c32_95, %c0_96] : memref<80x1024xf32, #tpu.memory_space<vmem>>, vector<8x256xf32>
    tpu.vector_store %arg16[%c32_95, %c0_96], %111 {strides = array<i32>} : memref<80x1024xf32, #tpu.memory_space<vmem>>, vector<8x256xf32>,
    %c255_i32_97 = arith.constant 255 : i32
    %129 = tpu.dynamic_rotate %111 by %c255_i32_97 dim 1 : vector<8x256xf32>, i32 -> vector<8x256xf32>
    %130 = vector.broadcast %9 : vector<1x256xf32> to vector<8x256xf32>
    %131 = arith.mulf %129, %130 : vector<8x256xf32>
    %c40_98 = arith.constant 40 : index
    %c0_99 = arith.constant 0 : index
    %132 = vector.load %arg16[%c40_98, %c0_99] : memref<80x1024xf32, #tpu.memory_space<vmem>>, vector<8x256xf32>
    tpu.vector_store %arg16[%c40_98, %c0_99], %131 {strides = array<i32>} : memref<80x1024xf32, #tpu.memory_space<vmem>>, vector<8x256xf32>,
    %c241_i32_100 = arith.constant 241 : i32
    %133 = tpu.dynamic_rotate %111 by %c241_i32_100 dim 1 : vector<8x256xf32>, i32 -> vector<8x256xf32>
    %134 = vector.broadcast %11 : vector<1x256xf32> to vector<8x256xf32>
    %135 = arith.mulf %133, %134 : vector<8x256xf32>
    %c48_101 = arith.constant 48 : index
    %c0_102 = arith.constant 0 : index
    %136 = vector.load %arg16[%c48_101, %c0_102] : memref<80x1024xf32, #tpu.memory_space<vmem>>, vector<8x256xf32>
    tpu.vector_store %arg16[%c48_101, %c0_102], %135 {strides = array<i32>} : memref<80x1024xf32, #tpu.memory_space<vmem>>, vector<8x256xf32>,
    %c240_i32_103 = arith.constant 240 : i32
    %137 = tpu.dynamic_rotate %111 by %c240_i32_103 dim 1 : vector<8x256xf32>, i32 -> vector<8x256xf32>
    %138 = vector.broadcast %13 : vector<1x256xf32> to vector<8x256xf32>
    %139 = arith.mulf %137, %138 : vector<8x256xf32>
    %c56_104 = arith.constant 56 : index
    %c0_105 = arith.constant 0 : index
    %140 = vector.load %arg16[%c56_104, %c0_105] : memref<80x1024xf32, #tpu.memory_space<vmem>>, vector<8x256xf32>
    tpu.vector_store %arg16[%c56_104, %c0_105], %139 {strides = array<i32>} : memref<80x1024xf32, #tpu.memory_space<vmem>>, vector<8x256xf32>,
    %c239_i32_106 = arith.constant 239 : i32
    %141 = tpu.dynamic_rotate %111 by %c239_i32_106 dim 1 : vector<8x256xf32>, i32 -> vector<8x256xf32>
    %142 = vector.broadcast %15 : vector<1x256xf32> to vector<8x256xf32>
    %143 = arith.mulf %141, %142 : vector<8x256xf32>
    %c64_107 = arith.constant 64 : index
    %c0_108 = arith.constant 0 : index
    %144 = vector.load %arg16[%c64_107, %c0_108] : memref<80x1024xf32, #tpu.memory_space<vmem>>, vector<8x256xf32>
    tpu.vector_store %arg16[%c64_107, %c0_108], %143 {strides = array<i32>} : memref<80x1024xf32, #tpu.memory_space<vmem>>, vector<8x256xf32>,
    %c0_109 = arith.constant 0 : index
    %c0_110 = arith.constant 0 : index
    %145 = vector.load %arg4[%c0_109, %c0_110] : memref<4x80xf32, #tpu.memory_space<vmem>>, vector<4x80xf32>
    %c0_111 = arith.constant 0 : index
    %c0_112 = arith.constant 0 : index
    %146 = vector.load %arg16[%c0_111, %c0_112] : memref<80x1024xf32, #tpu.memory_space<vmem>>, vector<80x768xf32>
    %cst_113 = arith.constant dense<0.000000e+00> : vector<4x768xf32>
    %147 = tpu.matmul %145, %146, %cst_113 {dimension_numbers = #tpu.dot_dimension_numbers<[1], [0], [0], [1], [0, 0, 1, 1], [], []>} : vector<4x80xf32>, vector<80x768xf32>, vector<4x768xf32> -> vector<4x768xf32>
    %148 = math.tanh %147 : vector<4x768xf32>
    %149 = vector.extract_strided_slice %148 {offsets = [0, 0], sizes = [4, 256], strides = [1, 1]} : vector<4x768xf32> to vector<4x256xf32>
    %150 = vector.extract_strided_slice %148 {offsets = [0, 256], sizes = [4, 256], strides = [1, 1]} : vector<4x768xf32> to vector<4x256xf32>
    %151 = vector.extract_strided_slice %148 {offsets = [0, 512], sizes = [4, 256], strides = [1, 1]} : vector<4x768xf32> to vector<4x256xf32>
    %c0_114 = arith.constant 0 : index
    %c0_115 = arith.constant 0 : index
    %c0_116 = arith.constant 0 : index
    %152 = vector.load %arg8[%c0_114, %c0_115, %c0_116] : memref<1x4x256xf32, #tpu.memory_space<vmem>>, vector<1x4x256xf32>
    %153 = vector.shape_cast %152 : vector<1x4x256xf32> to vector<4x256xf32>
    %154 = vector.shape_cast %149 : vector<4x256xf32> to vector<1x4x256xf32>
    tpu.vector_store %arg8[%c0_114, %c0_115, %c0_116], %154 {strides = array<i32>} : memref<1x4x256xf32, #tpu.memory_space<vmem>>, vector<1x4x256xf32>,
    %c0_117 = arith.constant 0 : index
    %c0_118 = arith.constant 0 : index
    %c0_119 = arith.constant 0 : index
    %155 = vector.load %arg11[%c0_117, %c0_118, %c0_119] : memref<1x4x256xf32, #tpu.memory_space<vmem>>, vector<1x4x256xf32>
    %156 = vector.shape_cast %155 : vector<1x4x256xf32> to vector<4x256xf32>
    %157 = vector.shape_cast %150 : vector<4x256xf32> to vector<1x4x256xf32>
    tpu.vector_store %arg11[%c0_117, %c0_118, %c0_119], %157 {strides = array<i32>} : memref<1x4x256xf32, #tpu.memory_space<vmem>>, vector<1x4x256xf32>,
    %c0_120 = arith.constant 0 : index
    %c0_121 = arith.constant 0 : index
    %c0_122 = arith.constant 0 : index
    %158 = vector.load %arg9[%c0_120, %c0_121, %c0_122] : memref<1x4x256xf32, #tpu.memory_space<vmem>>, vector<1x4x256xf32>
    %159 = vector.shape_cast %158 : vector<1x4x256xf32> to vector<4x256xf32>
    %160 = vector.shape_cast %151 : vector<4x256xf32> to vector<1x4x256xf32>
    tpu.vector_store %arg9[%c0_120, %c0_121, %c0_122], %160 {strides = array<i32>} : memref<1x4x256xf32, #tpu.memory_space<vmem>>, vector<1x4x256xf32>,
    %c0_123 = arith.constant 0 : index
    %c0_124 = arith.constant 0 : index
    %161 = vector.load %arg15[%c0_123, %c0_124] : memref<8x256xf32, #tpu.memory_space<vmem>>, vector<4x256xf32>
    tpu.vector_store %arg15[%c0_123, %c0_124], %150 {strides = array<i32>} : memref<8x256xf32, #tpu.memory_space<vmem>>, vector<4x256xf32>,
    %c0_125 = arith.constant 0 : index
    %c0_126 = arith.constant 0 : index
    %162 = vector.load %arg15[%c0_125, %c0_126] : memref<8x256xf32, #tpu.memory_space<vmem>>, vector<8x256xf32>
    %c17_i32_127 = arith.constant 17 : i32
    %163 = tpu.dynamic_rotate %162 by %c17_i32_127 dim 1 : vector<8x256xf32>, i32 -> vector<8x256xf32>
    %164 = vector.broadcast %1 : vector<1x256xf32> to vector<8x256xf32>
    %165 = arith.mulf %163, %164 : vector<8x256xf32>
    %c0_128 = arith.constant 0 : index
    %c768 = arith.constant 768 : index
    %166 = vector.load %arg16[%c0_128, %c768] : memref<80x1024xf32, #tpu.memory_space<vmem>>, vector<8x256xf32>
    tpu.vector_store %arg16[%c0_128, %c768], %165 {strides = array<i32>} : memref<80x1024xf32, #tpu.memory_space<vmem>>, vector<8x256xf32>,
    %c16_i32_129 = arith.constant 16 : i32
    %167 = tpu.dynamic_rotate %162 by %c16_i32_129 dim 1 : vector<8x256xf32>, i32 -> vector<8x256xf32>
    %168 = vector.broadcast %3 : vector<1x256xf32> to vector<8x256xf32>
    %169 = arith.mulf %167, %168 : vector<8x256xf32>
    %c8_130 = arith.constant 8 : index
    %c768_131 = arith.constant 768 : index
    %170 = vector.load %arg16[%c8_130, %c768_131] : memref<80x1024xf32, #tpu.memory_space<vmem>>, vector<8x256xf32>
    tpu.vector_store %arg16[%c8_130, %c768_131], %169 {strides = array<i32>} : memref<80x1024xf32, #tpu.memory_space<vmem>>, vector<8x256xf32>,
    %c15_i32_132 = arith.constant 15 : i32
    %171 = tpu.dynamic_rotate %162 by %c15_i32_132 dim 1 : vector<8x256xf32>, i32 -> vector<8x256xf32>
    %172 = vector.broadcast %5 : vector<1x256xf32> to vector<8x256xf32>
    %173 = arith.mulf %171, %172 : vector<8x256xf32>
    %c16_133 = arith.constant 16 : index
    %c768_134 = arith.constant 768 : index
    %174 = vector.load %arg16[%c16_133, %c768_134] : memref<80x1024xf32, #tpu.memory_space<vmem>>, vector<8x256xf32>
    tpu.vector_store %arg16[%c16_133, %c768_134], %173 {strides = array<i32>} : memref<80x1024xf32, #tpu.memory_space<vmem>>, vector<8x256xf32>,
    %c1_i32_135 = arith.constant 1 : i32
    %175 = tpu.dynamic_rotate %162 by %c1_i32_135 dim 1 : vector<8x256xf32>, i32 -> vector<8x256xf32>
    %176 = vector.broadcast %7 : vector<1x256xf32> to vector<8x256xf32>
    %177 = arith.mulf %175, %176 : vector<8x256xf32>
    %c24_136 = arith.constant 24 : index
    %c768_137 = arith.constant 768 : index
    %178 = vector.load %arg16[%c24_136, %c768_137] : memref<80x1024xf32, #tpu.memory_space<vmem>>, vector<8x256xf32>
    tpu.vector_store %arg16[%c24_136, %c768_137], %177 {strides = array<i32>} : memref<80x1024xf32, #tpu.memory_space<vmem>>, vector<8x256xf32>,
    %c32_138 = arith.constant 32 : index
    %c768_139 = arith.constant 768 : index
    %179 = vector.load %arg16[%c32_138, %c768_139] : memref<80x1024xf32, #tpu.memory_space<vmem>>, vector<8x256xf32>
    tpu.vector_store %arg16[%c32_138, %c768_139], %162 {strides = array<i32>} : memref<80x1024xf32, #tpu.memory_space<vmem>>, vector<8x256xf32>,
    %c255_i32_140 = arith.constant 255 : i32
    %180 = tpu.dynamic_rotate %162 by %c255_i32_140 dim 1 : vector<8x256xf32>, i32 -> vector<8x256xf32>
    %181 = vector.broadcast %9 : vector<1x256xf32> to vector<8x256xf32>
    %182 = arith.mulf %180, %181 : vector<8x256xf32>
    %c40_141 = arith.constant 40 : index
    %c768_142 = arith.constant 768 : index
    %183 = vector.load %arg16[%c40_141, %c768_142] : memref<80x1024xf32, #tpu.memory_space<vmem>>, vector<8x256xf32>
    tpu.vector_store %arg16[%c40_141, %c768_142], %182 {strides = array<i32>} : memref<80x1024xf32, #tpu.memory_space<vmem>>, vector<8x256xf32>,
    %c241_i32_143 = arith.constant 241 : i32
    %184 = tpu.dynamic_rotate %162 by %c241_i32_143 dim 1 : vector<8x256xf32>, i32 -> vector<8x256xf32>
    %185 = vector.broadcast %11 : vector<1x256xf32> to vector<8x256xf32>
    %186 = arith.mulf %184, %185 : vector<8x256xf32>
    %c48_144 = arith.constant 48 : index
    %c768_145 = arith.constant 768 : index
    %187 = vector.load %arg16[%c48_144, %c768_145] : memref<80x1024xf32, #tpu.memory_space<vmem>>, vector<8x256xf32>
    tpu.vector_store %arg16[%c48_144, %c768_145], %186 {strides = array<i32>} : memref<80x1024xf32, #tpu.memory_space<vmem>>, vector<8x256xf32>,
    %c240_i32_146 = arith.constant 240 : i32
    %188 = tpu.dynamic_rotate %162 by %c240_i32_146 dim 1 : vector<8x256xf32>, i32 -> vector<8x256xf32>
    %189 = vector.broadcast %13 : vector<1x256xf32> to vector<8x256xf32>
    %190 = arith.mulf %188, %189 : vector<8x256xf32>
    %c56_147 = arith.constant 56 : index
    %c768_148 = arith.constant 768 : index
    %191 = vector.load %arg16[%c56_147, %c768_148] : memref<80x1024xf32, #tpu.memory_space<vmem>>, vector<8x256xf32>
    tpu.vector_store %arg16[%c56_147, %c768_148], %190 {strides = array<i32>} : memref<80x1024xf32, #tpu.memory_space<vmem>>, vector<8x256xf32>,
    %c239_i32_149 = arith.constant 239 : i32
    %192 = tpu.dynamic_rotate %162 by %c239_i32_149 dim 1 : vector<8x256xf32>, i32 -> vector<8x256xf32>
    %193 = vector.broadcast %15 : vector<1x256xf32> to vector<8x256xf32>
    %194 = arith.mulf %192, %193 : vector<8x256xf32>
    %c64_150 = arith.constant 64 : index
    %c768_151 = arith.constant 768 : index
    %195 = vector.load %arg16[%c64_150, %c768_151] : memref<80x1024xf32, #tpu.memory_space<vmem>>, vector<8x256xf32>
    tpu.vector_store %arg16[%c64_150, %c768_151], %194 {strides = array<i32>} : memref<80x1024xf32, #tpu.memory_space<vmem>>, vector<8x256xf32>,
    %c0_152 = arith.constant 0 : index
    %c0_153 = arith.constant 0 : index
    %196 = vector.load %arg3[%c0_152, %c0_153] : memref<4x80xf32, #tpu.memory_space<vmem>>, vector<4x80xf32>
    %c0_154 = arith.constant 0 : index
    %c768_155 = arith.constant 768 : index
    %197 = vector.load %arg16[%c0_154, %c768_155] : memref<80x1024xf32, #tpu.memory_space<vmem>>, vector<80x256xf32>
    %cst_156 = arith.constant dense<0.000000e+00> : vector<4x256xf32>
    %198 = tpu.matmul %196, %197, %cst_156 {dimension_numbers = #tpu.dot_dimension_numbers<[1], [0], [0], [1], [0, 0, 1, 1], [], []>} : vector<4x80xf32>, vector<80x256xf32>, vector<4x256xf32> -> vector<4x256xf32>
    %199 = math.tanh %198 : vector<4x256xf32>
    %c0_157 = arith.constant 0 : index
    %c0_158 = arith.constant 0 : index
    %c0_159 = arith.constant 0 : index
    %200 = vector.load %arg12[%c0_157, %c0_158, %c0_159] : memref<1x4x256xf32, #tpu.memory_space<vmem>>, vector<1x4x256xf32>
    %201 = vector.shape_cast %200 : vector<1x4x256xf32> to vector<4x256xf32>
    %202 = vector.shape_cast %199 : vector<4x256xf32> to vector<1x4x256xf32>
    tpu.vector_store %arg12[%c0_157, %c0_158, %c0_159], %202 {strides = array<i32>} : memref<1x4x256xf32, #tpu.memory_space<vmem>>, vector<1x4x256xf32>,
    %c0_160 = arith.constant 0 : index
    %c0_161 = arith.constant 0 : index
    %203 = vector.load %arg5[%c0_160, %c0_161] : memref<3x80xf32, #tpu.memory_space<vmem>>, vector<3x80xf32>
    %c0_162 = arith.constant 0 : index
    %c0_163 = arith.constant 0 : index
    %204 = vector.load %arg16[%c0_162, %c0_163] : memref<80x1024xf32, #tpu.memory_space<vmem>>, vector<80x512xf32>
    %cst_164 = arith.constant dense<0.000000e+00> : vector<3x512xf32>
    %205 = tpu.matmul %203, %204, %cst_164 {dimension_numbers = #tpu.dot_dimension_numbers<[1], [0], [0], [1], [0, 0, 1, 1], [], []>} : vector<3x80xf32>, vector<80x512xf32>, vector<3x512xf32> -> vector<3x512xf32>
    %206 = vector.extract_strided_slice %205 {offsets = [0, 0], sizes = [3, 256], strides = [1, 1]} : vector<3x512xf32> to vector<3x256xf32>
    %c0_165 = arith.constant 0 : index
    %c0_166 = arith.constant 0 : index
    %c0_167 = arith.constant 0 : index
    %207 = vector.load %arg10[%c0_165, %c0_166, %c0_167] : memref<1x3x256xf32, #tpu.memory_space<vmem>>, vector<1x3x256xf32>
    %208 = vector.shape_cast %207 : vector<1x3x256xf32> to vector<3x256xf32>
    %209 = vector.shape_cast %206 : vector<3x256xf32> to vector<1x3x256xf32>
    tpu.vector_store %arg10[%c0_165, %c0_166, %c0_167], %209 {strides = array<i32>} : memref<1x3x256xf32, #tpu.memory_space<vmem>>, vector<1x3x256xf32>,
    %210 = vector.extract_strided_slice %205 {offsets = [0, 256], sizes = [3, 256], strides = [1, 1]} : vector<3x512xf32> to vector<3x256xf32>
    %c0_168 = arith.constant 0 : index
    %c0_169 = arith.constant 0 : index
    %c0_170 = arith.constant 0 : index
    %211 = vector.load %arg14[%c0_168, %c0_169, %c0_170] : memref<1x3x256xf32, #tpu.memory_space<vmem>>, vector<1x3x256xf32>
    %212 = vector.shape_cast %211 : vector<1x3x256xf32> to vector<3x256xf32>
    %213 = vector.shape_cast %210 : vector<3x256xf32> to vector<1x3x256xf32>
    tpu.vector_store %arg14[%c0_168, %c0_169, %c0_170], %213 {strides = array<i32>} : memref<1x3x256xf32, #tpu.memory_space<vmem>>, vector<1x3x256xf32>,
    return
  }
  func.func @transform_0(%arg0: i32) -> (i32, i32, i32) {
    %c0_i32 = arith.constant 0 : i32
    %c0_i32_0 = arith.constant 0 : i32
    %c0_i32_1 = arith.constant 0 : i32
    return %arg0, %c0_i32, %c0_i32_0 : i32, i32, i32
  }
  func.func @transform_1(%arg0: i32) -> (i32, i32, i32) {
    %c0_i32 = arith.constant 0 : i32
    %c0_i32_0 = arith.constant 0 : i32
    %c0_i32_1 = arith.constant 0 : i32
    return %arg0, %c0_i32, %c0_i32_0 : i32, i32, i32
  }
  func.func @transform_2(%arg0: i32) -> (i32, i32) {
    %c0_i32 = arith.constant 0 : i32
    %c0_i32_0 = arith.constant 0 : i32
    %c0_i32_1 = arith.constant 0 : i32
    return %c0_i32, %c0_i32_0 : i32, i32
  }
  func.func @transform_3(%arg0: i32) -> (i32, i32) {
    %c0_i32 = arith.constant 0 : i32
    %c0_i32_0 = arith.constant 0 : i32
    %c0_i32_1 = arith.constant 0 : i32
    return %c0_i32, %c0_i32_0 : i32, i32
  }
  func.func @transform_4(%arg0: i32) -> (i32, i32) {
    %c0_i32 = arith.constant 0 : i32
    %c0_i32_0 = arith.constant 0 : i32
    %c0_i32_1 = arith.constant 0 : i32
    return %c0_i32, %c0_i32_0 : i32, i32
  }
  func.func @transform_5(%arg0: i32) -> (i32, i32, i32) {
    %c0_i32 = arith.constant 0 : i32
    %c0_i32_0 = arith.constant 0 : i32
    %c0_i32_1 = arith.constant 0 : i32
    %c0_i32_2 = arith.constant 0 : i32
    return %c0_i32, %c0_i32_0, %c0_i32_1 : i32, i32, i32
  }
  func.func @transform_6(%arg0: i32) -> (i32, i32, i32) {
    %c0_i32 = arith.constant 0 : i32
    %c0_i32_0 = arith.constant 0 : i32
    %c0_i32_1 = arith.constant 0 : i32
    return %arg0, %c0_i32, %c0_i32_0 : i32, i32, i32
  }
  func.func @transform_7(%arg0: i32) -> (i32, i32, i32) {
    %c0_i32 = arith.constant 0 : i32
    %c0_i32_0 = arith.constant 0 : i32
    %c0_i32_1 = arith.constant 0 : i32
    return %arg0, %c0_i32, %c0_i32_0 : i32, i32, i32
  }
  func.func @transform_8(%arg0: i32) -> (i32, i32, i32) {
    %c0_i32 = arith.constant 0 : i32
    %c0_i32_0 = arith.constant 0 : i32
    %c0_i32_1 = arith.constant 0 : i32
    return %arg0, %c0_i32, %c0_i32_0 : i32, i32, i32
  }
  func.func @transform_9(%arg0: i32) -> (i32, i32, i32) {
    %c0_i32 = arith.constant 0 : i32
    %c0_i32_0 = arith.constant 0 : i32
    %c0_i32_1 = arith.constant 0 : i32
    return %arg0, %c0_i32, %c0_i32_0 : i32, i32, i32
  }
  func.func @transform_10(%arg0: i32) -> (i32, i32, i32) {
    %c0_i32 = arith.constant 0 : i32
    %c0_i32_0 = arith.constant 0 : i32
    %c0_i32_1 = arith.constant 0 : i32
    return %arg0, %c0_i32, %c0_i32_0 : i32, i32, i32
  }
  func.func @transform_11(%arg0: i32) -> (i32, i32, i32) {
    %c0_i32 = arith.constant 0 : i32
    %c0_i32_0 = arith.constant 0 : i32
    %c0_i32_1 = arith.constant 0 : i32
    return %arg0, %c0_i32, %c0_i32_0 : i32, i32, i32
  }
  func.func @transform_12(%arg0: i32) -> (i32, i32, i32) {
    %c0_i32 = arith.constant 0 : i32
    %c0_i32_0 = arith.constant 0 : i32
    %c0_i32_1 = arith.constant 0 : i32
    return %arg0, %c0_i32, %c0_i32_0 : i32, i32, i32
  }
  func.func @transform_13(%arg0: i32) -> (i32, i32, i32) {
    %c0_i32 = arith.constant 0 : i32
    %c0_i32_0 = arith.constant 0 : i32
    %c0_i32_1 = arith.constant 0 : i32
    return %arg0, %c0_i32, %c0_i32_0 : i32, i32, i32
  }
}

</mosaic_0001>

<bundles_post_ra>
// kernel: accsegnet_forward.1
= control target key start
LH: loop header
LB: loop body
LE: loop exit
PB: predicated region body
PF: predicated region fallthrough
CT: control target
= control target key end

     0   :  { %s2500_s25 = smov 0   ;;  %s3201_s0 = inlined_call_operand.vmem [shape: f32[2,4,256], index: 0, kind: input, shape index: {}]   ;;  %s3202_s1 = inlined_call_operand.vmem [shape: f32[2,4,256], index: 1, kind: input, shape index: {}]   ;;  %s3203_s2 = inlined_call_operand.vmem [shape: f32[4,80], index: 2, kind: input, shape index: {}]   ;;  %s3204_s3 = inlined_call_operand.vmem [shape: f32[4,80], index: 3, kind: input, shape index: {}]   ;;  %s3205_s4 = inlined_call_operand.vmem [shape: f32[3,80], index: 4, kind: input, shape index: {}]   ;;  %s3206_s5 = inlined_call_operand.vmem [shape: f32[9,1,256], index: 5, kind: input, shape index: {}]   ;;  %s3207_s6 = inlined_call_operand.vmem [shape: f32[2,4,256], index: 6, kind: output, shape index: {0}]   ;;  %s3208_s7 = inlined_call_operand.vmem [shape: f32[2,4,256], index: 7, kind: output, shape index: {1}]   ;;  %s3209_s8 = inlined_call_operand.vmem [shape: f32[2,4,256], index: 8, kind: output, shape index: {2}]   ;;  %s3210_s9 = inlined_call_operand.vmem [shape: f32[2,3,256], index: 9, kind: output, shape index: {3}]   ;;  %s3211_s10 = inlined_call_operand.vmem [shape: f32[2,4,256], index: 10, kind: output, shape index: {4}]   ;;  %s3212_s11 = inlined_call_operand.vmem [shape: f32[2,4,256], index: 11, kind: output, shape index: {5}]   ;;  %s3213_s12 = inlined_call_operand.vmem [shape: f32[2,4,256], index: 12, kind: output, shape index: {6}]   ;;  %s3214_s13 = inlined_call_operand.vmem [shape: f32[2,3,256], index: 13, kind: output, shape index: {7}]  }
   0x1 LB: > { %s2121_s26 = sadd.s32 4294967295, %s2417_s25   ;;  %p2125_p0 = scmp.ge.s32.totalorder %s2417_s25, 1  ;;  %s2417_s25 = sphi %s2500_s25, %s24_s25  }
   0x2   : > { %p412_p1 = scmp.lt.s32.totalorder %s2417_s25, 3 }
   0x4   : > { %p413_p2 = pnand %p2125_p0, %p412_p1 }
   0x5   : > { %p496_p3 = scmp.lt.s32.totalorder (!%p413_p2), %s2121_s26, 1  ;;  %v2419_v0 = vmov (!%p413_p2), 0.0   ;;  %s2420_s17 = smov (!%p413_p2), 16   ;;  %v561_v15 = vlaneseq (!%p413_p2)  ;;  %v2146_v22 = vld [vmem:[%s3206_s5 + $0x2] sm:$0x3] (!%p413_p2)  ;;  %vm2429_vm9 = vmmov (!%p413_p2), 1  }
   0x6   : > { %416 = sbr.rel (%p413_p2) target bundleno = 849 (0x351), region = 44  ;;  %574 = vst [vmem:[#allocation2] sm:$0xff] (!%p413_p2), %v2419_v0  ;;  %575 = vst [vmem:[#allocation2 + $0x8] sm:$0xff] (!%p413_p2), %v2419_v0  ;;  %1034 = vmatprep.mubr.f32.mxu1 (!%p413_p2), %v2419_v0  ;;  %963 = vmatprep.mubr.f32.mxu0 (!%p413_p2), %v2419_v0  ;;  %s2421_s18 = smov (!%p413_p2), 17   ;;  %v2148_v25 = vld [vmem:[%s3206_s5 + $0x6] sm:$0x3] (!%p413_p2) }
   0x7   : > { %s2422_s19 = smov (!%p413_p2), 15   ;;  %s2423_s20 = smov (!%p413_p2), 1   ;;  %v2594_v18 = vshrl.u32 (!%p413_p2), %v561_v15, 7  ;;  %v2596_v19 = vand.u32 (!%p413_p2), 127, %v561_v15  ;;  %v546_v26 = vld [vmem:[%s3206_s5] sm:$0x3] (!%p413_p2) }
   0x8   : > { %s2424_s21 = smov (!%p413_p2), 127   ;;  %s2425_s22 = smov (!%p413_p2), 113   ;;  %v2147_v28 = vld [vmem:[%s3206_s5 + $0x4] sm:$0x3] (!%p413_p2)  ;;  %v2149_v33 = vld [vmem:[%s3206_s5 + $0xa] sm:$0x3] (!%p413_p2) }
   0x9   : > { %s2426_s23 = smov (!%p413_p2), 112   ;;  %s2427_s24 = smov (!%p413_p2), 111   ;;  %v2604_v23 = vsub.s32 (!%p413_p2), 0, %v2594_v18  ;;  %vm612_vm0 = vcmp.lt.s32.totalorder (!%p413_p2), %v2596_v19, 16  ;;  %v600_v24 = vsub.s32 (!%p413_p2), 1, %v2594_v18  ;;  %vm656_vm1 = vcmp.lt.s32.totalorder (!%p413_p2), %v2596_v19, 1 }
   0xa   : > { %vm634_vm2 = vcmp.lt.s32.totalorder (!%p413_p2), %v2596_v19, 15  ;;  %vm590_vm3 = vcmp.lt.s32.totalorder (!%p413_p2), %v2596_v19, 17  ;;  %vm680_vm4 = vcmp.lt.s32.totalorder (!%p413_p2), %v2596_v19, 127  ;;  %v2151_v52 = vld [vmem:[%s3206_s5 + $0xe] sm:$0x3] (!%p413_p2)  ;;  %vm724_vm5 = vcmp.lt.s32.totalorder (!%p413_p2), %v2596_v19, 112 }
   0xb   : > { %v2615_v27 = vrot.slane (!%p413_p2), %v2146_v22, %v2604_v23  ;;  %v2625_v31 = vrot.slane (!%p413_p2), %v2146_v22, %v600_v24  ;;  %v2633_v34 = vrot.slane (!%p413_p2), %v2148_v25, %v600_v24  ;;  %v2637_v35 = vrot.slane (!%p413_p2), %v546_v26, %v2604_v23  ;;  %v2150_v59 = vld [vmem:[%s3206_s5 + $0xc] sm:$0x3] (!%p413_p2) }
   0xc   : > { %v2639_v36 = vrot.slane (!%p413_p2), %v546_v26, %v600_v24  ;;  %v2644_v38 = vrot.slane (!%p413_p2), %v2147_v28, %v2604_v23  ;;  %v2646_v39 = vrot.slane (!%p413_p2), %v2147_v28, %v600_v24  ;;  %v2652_v42 = vrot.slane (!%p413_p2), %v2148_v25, %v2604_v23 }
   0xd   : > { %s3221_s26 = smov (!%p496_p3, %s2121_s26), 1  ;;  %v2655_v43 = vrot.slane %v2149_v33, %v600_v24  ;;  %vm702_vm6 = vcmp.lt.s32.totalorder %v2596_v19, 113  ;;  %vm746_vm7 = vcmp.lt.s32.totalorder %v2596_v19, 111  ;;  %v2714_v15 = vrot.slane %v2151_v52, %v2604_v23  ;;  %v1525_v19 = vld [vmem:[%s3203_s2] sm:$0xf] }
   0xe   : > { %s2512_s27 = sshll.u32 %s3221_s26, 3  ;;  %vm563_vm8 = vcmp.eq.s32.totalorder %v2594_v18, 0  ;;  %vm895_vm11 = vcmask 654336  }
   0xf   : > { %s505_s30 = scalar_lea.vmem %s3202_s1, %s2512_s27  ;;  %s500_s16 = scalar_lea.vmem %s3201_s0, %s2512_s27  ;;  %vm2779_vm10 = vmpackc.low %vm563_vm8, %vm2429_vm9 }
  0x10   : > { %v576_v1 = vld [vmem:[%s505_s30] sm:$0xff]  ;;  %s510_s28 = scalar_lea.vmem %s3207_s6, %s2512_s27  ;;  %s530_s14 = scalar_lea.vmem %s3211_s10, %s2512_s27 }
  0x11   : > { %580 = vst [vmem:[#allocation2] sm:$0xf] %v576_v1  ;;  %v578_v2 = vcombine.high %v576_v1, %v576_v1  ;;  %v764_v3 = vld [vmem:[%s500_s16] sm:$0xff]  ;;  %v2687_v1 = vrot.slane %v2149_v33, %v2604_v23  ;;  %v2729_v33 = vrot.slane %v2150_v59, %v2604_v23  ;;  %s515_s16 = scalar_lea.vmem %s3208_s7, %s2512_s27  ;;  %s520_s29 = scalar_lea.vmem %s3209_s8, %s2512_s27 }
  0x12   : > { %v766_v4 = vcombine.high %v764_v3, %v764_v3 }
  0x13   : > { %581 = vst [vmem:[#allocation2 + $0x8] sm:$0xf] %v578_v2  ;;  %v2690_v2 = vrot.slane %v2151_v52, %v600_v24 }
  0x18   : > { %v2522_v5 = vld [vmem:[#allocation2] sm:$0xff] }
  0x19   : > { %768 = vst [vmem:[#allocation2] sm:$0xf] %v764_v3  ;;  %v2152_v3 = vld [vmem:[%s3206_s5 + $0x10] sm:$0x3] }
  0x1a   : > { %v2524_v6 = vld [vmem:[#allocation2 + $0x8] sm:$0xff] }
  0x1b   : > { %769 = vst [vmem:[#allocation2 + $0x8] sm:$0xf] %v766_v4 }
  0x20   : > { %v2526_v7 = vld [vmem:[#allocation2] sm:$0xff] }
  0x21   : > { %782 = vrot.lane.b32.xlu1 %v2526_v7, %s2420_s17  ;;  %772 = vrot.lane.b32.xlu0 %v2526_v7, %s2421_s18 }
  0x22   : > { %v2532_v8 = vld [vmem:[#allocation2 + $0x8] sm:$0xff] }
  0x25   : > { %792 = vrot.lane.b32.xlu0 %v2526_v7, %s2422_s19  ;;  %784 = vrot.lane.b32.xlu1 %v2532_v8, %s2420_s17 }
  0x29   : > { %802 = vrot.lane.b32.xlu0 %v2526_v7, %s2423_s20  ;;  %794 = vrot.lane.b32.xlu1 %v2532_v8, %s2422_s19 }
  0x2d   : > { %814 = vrot.lane.b32.xlu0 %v2526_v7, %s2424_s21  ;;  %804 = vrot.lane.b32.xlu1 %v2532_v8, %s2423_s20 }
  0x31   : > { %824 = vrot.lane.b32.xlu0 %v2526_v7, %s2425_s22  ;;  %816 = vrot.lane.b32.xlu1 %v2532_v8, %s2424_s21 }
  0x35   : > { %834 = vrot.lane.b32.xlu0 %v2526_v7, %s2426_s23  ;;  %826 = vrot.lane.b32.xlu1 %v2532_v8, %s2425_s22 }
  0x39   : > { %836 = vrot.lane.b32.xlu1 %v2532_v8, %s2426_s23  ;;  %774 = vrot.lane.b32.xlu0 %v2532_v8, %s2421_s18 }
  0x3d   : > { %846 = vrot.lane.b32.xlu1 %v2532_v8, %s2427_s24  ;;  %844 = vrot.lane.b32.xlu0 %v2526_v7, %s2427_s24 }
  0x41   : > { %586 = vrot.lane.b32.xlu1 %v2524_v6, %s2421_s18  ;;  %584 = vrot.lane.b32.xlu0 %v2522_v5, %s2421_s18 }
  0x45   : > { %610 = vrot.lane.b32.xlu1 %v2524_v6, %s2420_s17  ;;  %608 = vrot.lane.b32.xlu0 %v2522_v5, %s2420_s17 }
  0x49   : > { %632 = vrot.lane.b32.xlu1 %v2524_v6, %s2422_s19  ;;  %630 = vrot.lane.b32.xlu0 %v2522_v5, %s2422_s19 }
  0x4d   : > { %654 = vrot.lane.b32.xlu1 %v2524_v6, %s2423_s20  ;;  %652 = vrot.lane.b32.xlu0 %v2522_v5, %s2423_s20 }
  0x51   : > { %678 = vrot.lane.b32.xlu1 %v2524_v6, %s2424_s21  ;;  %676 = vrot.lane.b32.xlu0 %v2522_v5, %s2424_s21 }
  0x55   : > { %700 = vrot.lane.b32.xlu1 %v2524_v6, %s2425_s22  ;;  %698 = vrot.lane.b32.xlu0 %v2522_v5, %s2425_s22 }
  0x59   : > { %722 = vrot.lane.b32.xlu1 %v2524_v6, %s2426_s23  ;;  %720 = vrot.lane.b32.xlu0 %v2522_v5, %s2426_s23 }
  0x5d   : > { %744 = vrot.lane.b32.xlu1 %v2524_v6, %s2427_s24  ;;  %742 = vrot.lane.b32.xlu0 %v2522_v5, %s2427_s24 }
  0x93   : > { %v783_v9 = vpop.permute.xlu1 %782  ;;  %v773_v10 = vpop.permute.xlu0 %772 }
  0x97   : > { %v793_v11 = vpop.permute.xlu0 %792  ;;  %v785_v12 = vpop.permute.xlu1 %784 }
  0x98   : > { %v787_v32 = vsel %vm612_vm0, %v785_v12, %v783_v9  ;;  %v786_v37 = vsel %vm612_vm0, %v783_v9, %v785_v12  ;;  %v2703_v12 = vrot.slane %v2150_v59, %v600_v24 }
  0x99   : > { %v788_v41 = vmul.f32 %v787_v32, %v2615_v27  ;;  %v789_v50 = vmul.f32 %v786_v37, %v2625_v31 }
  0x9b   : > { %v803_v13 = vpop.permute.xlu0 %802  ;;  %v795_v14 = vpop.permute.xlu1 %794 }
  0x9c   : > { %v796_v46 = vsel %vm634_vm2, %v793_v11, %v795_v14  ;;  %v797_v55 = vsel %vm634_vm2, %v795_v14, %v793_v11 }
  0x9d   : > { %v799_v57 = vmul.f32 %v796_v46, %v2646_v39  ;;  %v798_v4 = vmul.f32 %v797_v55, %v2644_v38  ;;  %v2745_v46 = vrot.slane %v2152_v3, %v2604_v23 }
  0x9f   : > { %v815_v16 = vpop.permute.xlu0 %814  ;;  %v805_v17 = vpop.permute.xlu1 %804 }
  0xa0   : > { %v806_v40 = vsel %vm656_vm1, %v803_v13, %v805_v17  ;;  %v807_v47 = vsel %vm656_vm1, %v805_v17, %v803_v13  ;;  %v2719_v17 = vrot.slane %v2152_v3, %v600_v24 }
  0xa1   : > { %v809_v51 = vmul.f32 %v806_v40, %v2633_v34  ;;  %v808_v58 = vmul.f32 %v807_v47, %v2652_v42 }
  0xa3   : > { %v2598_v20 = vpop.permute.xlu0 %824  ;;  %v817_v21 = vpop.permute.xlu1 %816  ;;  %v2701_v11 = vpack.c.bf16 %v809_v51, %v799_v57 }
  0xa4   : > { %v819_v56 = vsel %vm680_vm4, %v817_v21, %v815_v16  ;;  %v818_v9 = vsel %vm680_vm4, %v815_v16, %v817_v21  ;;  %v2717_v16 = vpack.c.bf16 %v808_v58, %v798_v4 }
  0xa5   : > { %v820_v25 = vmul.f32 %v818_v9, %v2687_v1 }
  0xa7   : > { %v2621_v29 = vpop.permute.xlu0 %834  ;;  %v2623_v30 = vpop.permute.xlu1 %826 }
  0xa8   : > { %v829_v14 = vsel %vm702_vm6, %v2623_v30, %v2598_v20 }
  0xab   : > { %v837_v44 = vpop.permute.xlu1 %836  ;;  %v775_v45 = vpop.permute.xlu0 %774 }
  0xac   : > { %v776_v48 = vsel %vm590_vm3, %v773_v10, %v775_v45  ;;  %v777_v49 = vsel %vm590_vm3, %v775_v45, %v773_v10  ;;  %v821_v10 = vmul.f32 %v819_v56, %v2655_v43  ;;  %v839_v13 = vsel %vm724_vm5, %v837_v44, %v2621_v29 }
  0xad   : > { %v778_v53 = vmul.f32 %v777_v49, %v2637_v35  ;;  %v779_v54 = vmul.f32 %v776_v48, %v2639_v36  ;;  %v838_v24 = vsel %vm724_vm5, %v2621_v29, %v837_v44  ;;  %v841_v37 = vmul.f32 %v839_v13, %v2690_v2 }
  0xae   : > { %v2736_v40 = vpack.c.bf16 %v821_v10, %v2532_v8  ;;  %v831_v45 = vmul.f32 %v829_v14, %v2703_v12  ;;  %v2755_v49 = vpack.c.bf16 %v820_v25, %v2526_v7  ;;  %v3215_v7 = vmov 1.0  }
  0xaf   : > { %v2682_v60 = vpack.c.bf16 %v789_v50, %v779_v54  ;;  %v2684_v61 = vpack.c.bf16 %v788_v41, %v778_v53  ;;  %v847_v62 = vpop.permute.xlu1 %846  ;;  %v845_v63 = vpop.permute.xlu0 %844  ;;  %v828_v41 = vsel %vm702_vm6, %v2598_v20, %v2623_v30  ;;  %v840_v30 = vmul.f32 %v838_v24, %v2714_v15 }
  0xb0   : > { %v849_v26 = vsel %vm746_vm7, %v847_v62, %v845_v63  ;;  %v848_v29 = vsel %vm746_vm7, %v845_v63, %v847_v62  ;;  %v2762_v51 = vpack.c.bf16 %v841_v37, %v831_v45  ;;  %v830_v54 = vmul.f32 %v828_v41, %v2729_v33 }
  0xb1   : > { %2213 = vmatprep.subr.bf16.mxu1 %v2682_v60  ;;  %v851_v44 = vmul.f32 %v849_v26, %v2719_v17  ;;  %v850_v55 = vmul.f32 %v848_v29, %v2745_v46 }
  0xb2   : > { %2215 = vmatpush1.bf16.msra.mxu1 %v2684_v61  ;;  %v2783_v3 = vpack.c.bf16 %v840_v30, %v830_v54 }
  0xb3   : > { %2217 = vmatprep.subr.bf16.mxu1 %v2701_v11  ;;  %v587_v21 = vpop.permute.xlu1 %586  ;;  %v585_v22 = vpop.permute.xlu0 %584  ;;  %v2770_v56 = vpack.c.bf16 %v3215_v7, %v851_v44  ;;  %v2791_v10 = vpack.c.bf16 %v3215_v7, %v850_v55 }
  0xb4   : > { %v591_v28 = vsel %vm590_vm3, %v585_v22, %v587_v21  ;;  %v592_v32 = vsel %vm590_vm3, %v587_v21, %v585_v22 }
  0xb5   : > { %v604_v8 = vmul.f32 %v2637_v35, %v592_v32  ;;  %v605_v47 = vmul.f32 %v2639_v36, %v591_v28  ;;  %v854_v32 = vld [vmem:[%s3203_s2] sm:$0xf] }
  0xb6   : > { %2219 = vmatpush1.bf16.msra.mxu1 %v2717_v16 }
  0xb7   : > { %2221 = vmatprep.subr.bf16.mxu1 %v2736_v40  ;;  %v611_v48 = vpop.permute.xlu1 %610  ;;  %v609_v20 = vpop.permute.xlu0 %608 }
  0xb8   : > { %v613_v23 = vsel %vm612_vm0, %v609_v20, %v611_v48  ;;  %v614_v50 = vsel %vm612_vm0, %v611_v48, %v609_v20 }
  0xb9   : > { %v626_v52 = vmul.f32 %v2615_v27, %v614_v50  ;;  %v627_v53 = vmul.f32 %v2625_v31, %v613_v23 }
  0xba   : > { %2223 = vmatpush1.bf16.msra.mxu1 %v2755_v49 }
  0xbb   : > { %2225 = vmatprep.subr.bf16.mxu1 %v2762_v51  ;;  %v633_v57 = vpop.permute.xlu1 %632  ;;  %v631_v58 = vpop.permute.xlu0 %630  ;;  %v2773_v59 = vpack.c.bf16 %v627_v53, %v605_v47  ;;  %v2775_v62 = vpack.c.bf16 %v626_v52, %v604_v8 }
  0xbc   : > { %v635_v4 = vsel %vm634_vm2, %v631_v58, %v633_v57  ;;  %v636_v9 = vsel %vm634_vm2, %v633_v57, %v631_v58 }
  0xbd   : > { %2191 = vmatprep.subr.bf16.mxu0 %v2773_v59  ;;  %v648_v18 = vmul.f32 %v2644_v38, %v636_v9  ;;  %v649_v13 = vmul.f32 %v2646_v39, %v635_v4 }
  0xbe   : > { %2227 = vmatpush1.bf16.msra.mxu1 %v2783_v3  ;;  %2193 = vmatpush1.bf16.msra.mxu0 %v2775_v62 }
  0xbf   : > { %2230 = vmatprep.subr.msk.bf16.mxu1 %vm2779_vm10, %v2770_v56  ;;  %v655_v14 = vpop.permute.xlu1 %654  ;;  %v653_v21 = vpop.permute.xlu0 %652 }
  0xc0   : > { %v657_v22 = vsel %vm656_vm1, %v653_v21, %v655_v14  ;;  %v658_v25 = vsel %vm656_vm1, %v655_v14, %v653_v21 }
  0xc1   : > { %v670_v26 = vmul.f32 %v2652_v42, %v658_v25  ;;  %v671_v28 = vmul.f32 %v2633_v34, %v657_v22 }
  0xc2   : > { %2233 = vmatpush1.bf16.msk.msra.mxu1 %vm2779_vm10, %v2791_v10 }
  0xc3   : > { %2257 = vmatprep.subr.bf16.mxu1 %v2773_v59  ;;  %v679_v24 = vpop.permute.xlu1 %678  ;;  %v677_v37 = vpop.permute.xlu0 %676  ;;  %v2813_v41 = vpack.c.bf16 %v671_v28, %v649_v13  ;;  %v2815_v45 = vpack.c.bf16 %v670_v26, %v648_v18 }
  0xc4   : > { %v681_v29 = vsel %vm680_vm4, %v677_v37, %v679_v24  ;;  %v682_v44 = vsel %vm680_vm4, %v679_v24, %v677_v37  ;;  %v2887_v37 = vld [vmem:[%s3204_s3] sm:$0xf] }
  0xc5   : > { %2155 = vmatmul.mubr.msk.f32.vlgmr.msra.gmra.mrb[0].mxu1 %vm895_vm11, %v854_v32  ;;  %v694_v8 = vmul.f32 %v2687_v1, %v681_v29  ;;  %v695_v47 = vmul.f32 %v2655_v43, %v682_v44  ;;  %2195 = vmatprep.subr.bf16.mxu0 %v2813_v41 }
  0xc6   : > { %2259 = vmatpush1.bf16.msra.mxu1 %v2775_v62  ;;  %2197 = vmatpush1.bf16.msra.mxu0 %v2815_v45 }
  0xc7   : > { %2261 = vmatprep.subr.bf16.mxu1 %v2813_v41  ;;  %v701_v48 = vpop.permute.xlu1 %700  ;;  %v699_v20 = vpop.permute.xlu0 %698  ;;  %v2829_v30 = vpack.c.bf16 %v695_v47, %v2524_v6  ;;  %v2832_v23 = vpack.c.bf16 %v694_v8, %v2522_v5  ;;  %1340 = vmatprep.mubr.f32.mxu1 %v2419_v0 }
  0xc8   : > { %v703_v50 = vsel %vm702_vm6, %v699_v20, %v701_v48  ;;  %v704_v52 = vsel %vm702_vm6, %v701_v48, %v699_v20 }
  0xc9   : > { %2199 = vmatprep.subr.bf16.mxu0 %v2829_v30  ;;  %v716_v6 = vmul.f32 %v2729_v33, %v703_v50  ;;  %v717_v53 = vmul.f32 %v2703_v12, %v704_v52 }
  0xca   : > { %2263 = vmatpush1.bf16.msra.mxu1 %v2815_v45  ;;  %2201 = vmatpush1.bf16.msra.mxu0 %v2832_v23 }
  0xcb   : > { %v723_v5 = vpop.permute.xlu1 %722  ;;  %v721_v54 = vpop.permute.xlu0 %720  ;;  %2265 = vmatprep.subr.bf16.mxu1 %v2829_v30 }
  0xcc   : > { %v725_v55 = vsel %vm724_vm5, %v721_v54, %v723_v5  ;;  %v726_v57 = vsel %vm724_vm5, %v723_v5, %v721_v54 }
  0xcd   : > { %v738_v58 = vmul.f32 %v2714_v15, %v725_v55  ;;  %v739_v4 = vmul.f32 %v2690_v2, %v726_v57 }
  0xce   : > { %2267 = vmatpush1.bf16.msra.mxu1 %v2832_v23 }
  0xcf   : > { %v2852_v9 = vpack.c.bf16 %v739_v4, %v717_v53  ;;  %v2854_v18 = vpack.c.bf16 %v738_v58, %v716_v6  ;;  %v745_v13 = vpop.permute.xlu1 %744  ;;  %v743_v14 = vpop.permute.xlu0 %742 }
  0xd0   : > { %v747_v21 = vsel %vm746_vm7, %v743_v14, %v745_v13  ;;  %v748_v22 = vsel %vm746_vm7, %v745_v13, %v743_v14 }
  0xd1   : > { %2203 = vmatprep.subr.bf16.mxu0 %v2852_v9  ;;  %2269 = vmatprep.subr.bf16.mxu1 %v2852_v9  ;;  %v760_v25 = vmul.f32 %v2745_v46, %v747_v21  ;;  %v761_v26 = vmul.f32 %v2719_v17, %v748_v22 }
  0xd2   : > { %2205 = vmatpush1.bf16.msra.mxu0 %v2854_v18  ;;  %2271 = vmatpush1.bf16.msra.mxu1 %v2854_v18 }
  0xd3   : > { %v2867_v28 = vpack.c.bf16 %v3215_v7, %v761_v26  ;;  %v2870_v24 = vpack.c.bf16 %v3215_v7, %v760_v25 }
  0xd5   : > { %2208 = vmatprep.subr.msk.bf16.mxu0 %vm2779_vm10, %v2867_v28  ;;  %2274 = vmatprep.subr.msk.bf16.mxu1 %vm2779_vm10, %v2867_v28 }
  0xd6   : > { %2211 = vmatpush1.bf16.msk.msra.mxu0 %vm2779_vm10, %v2870_v24  ;;  %2277 = vmatpush1.bf16.msk.msra.mxu1 %vm2779_vm10, %v2870_v24 }
  0xd9   : > { %2157 = vmatmul.mubr.msk.f32.vlgmr.msra.gmra.mrb[2].mxu1 %vm895_vm11, %v2887_v37  ;;  %2154 = vmatmul.mubr.msk.f32.vlgmr.msra.gmra.mrb[0].mxu0 %vm895_vm11, %v854_v32 }
  0xda   : > { %1269 = vmatprep.mubr.f32.mxu0 %v2419_v0  ;;  %1613 = vmatprep.mubr.f32.mxu1 %v2419_v0 }
 0x198   : > { %v1036_v29 = vpop.f32.mrb[0].mxu1 }
 0x199   : > { %2387 = vtanh.f32 %v1036_v29  ;;  %v1038_v44 = vpop.f32.mrb[1].mxu1 }
 0x19a   : > { %2389 = vtanh.f32 %v1038_v44 }
 0x1a3   : > { %v2388_v8 = vpop.eup %2387 }
 0x1a4   : > { %v2390_v47 = vpop.eup %2389  ;;  %1055 = vst [vmem:[#allocation2] sm:$0xf] %v2388_v8 }
 0x1a5   : > { %v1052_v48 = vcombine.low %v2388_v8, %v2390_v47  ;;  %1056 = vst [vmem:[#allocation2 + $0x8] sm:$0xf] %v2390_v47 }
 0x1a7   : > { %1054 = vst [vmem:[%s510_s28] sm:$0xff] %v1052_v48 }
 0x1ab   : > { %v2898_v20 = vld [vmem:[#allocation2] sm:$0xff] }
 0x1ac   : > { %1059 = vrot.lane.b32.xlu0 %v2898_v20, %s2421_s18  ;;  %v2902_v32 = vld [vmem:[#allocation2 + $0x8] sm:$0xff]  ;;  %v1342_v50 = vpop.f32.mrb[2].mxu1  ;;  %v965_v57 = vpop.f32.mrb[0].mxu0 }
 0x1ad   : > { %1061 = vrot.lane.b32.xlu1 %v2902_v32, %s2421_s18  ;;  %2391 = vtanh.f32 %v1342_v50  ;;  %v1344_v52 = vpop.f32.mrb[3].mxu1  ;;  %v967_v58 = vpop.f32.mrb[1].mxu0 }
 0x1ae   : > { %2393 = vtanh.f32 %v1344_v52 }
 0x1af   : > { %2395 = vtanh.f32 %v965_v57 }
 0x1b0   : > { %1069 = vrot.lane.b32.xlu0 %v2898_v20, %s2420_s17  ;;  %2397 = vtanh.f32 %v967_v58 }
 0x1b1   : > { %1071 = vrot.lane.b32.xlu1 %v2902_v32, %s2420_s17 }
 0x1b4   : > { %1079 = vrot.lane.b32.xlu0 %v2898_v20, %s2422_s19 }
 0x1b5   : > { %1081 = vrot.lane.b32.xlu1 %v2902_v32, %s2422_s19 }
 0x1b7   : > { %v2392_v6 = vpop.eup %2391 }
 0x1b8   : > { %v2394_v53 = vpop.eup %2393  ;;  %1439 = vst [vmem:[#allocation2] sm:$0xf] %v2392_v6  ;;  %1089 = vrot.lane.b32.xlu0 %v2898_v20, %s2423_s20 }
 0x1b9   : > { %v1431_v5 = vcombine.low %v2392_v6, %v2394_v53  ;;  %1440 = vst [vmem:[#allocation2 + $0x8] sm:$0xf] %v2394_v53  ;;  %1091 = vrot.lane.b32.xlu1 %v2902_v32, %s2423_s20  ;;  %v2396_v4 = vpop.eup %2395 }
 0x1ba   : > { %v2398_v13 = vpop.eup %2397 }
 0x1bb   : > { %1433 = vst [vmem:[%s530_s14] sm:$0xff] %v1431_v5  ;;  %v1047_v14 = vcombine.low %v2396_v4, %v2398_v13 }
 0x1bc   : > { %1101 = vrot.lane.b32.xlu0 %v2898_v20, %s2424_s21 }
 0x1bd   : > { %1103 = vrot.lane.b32.xlu1 %v2902_v32, %s2424_s21 }
 0x1bf   : > { %v2938_v54 = vld [vmem:[#allocation2] sm:$0xff] }
 0x1c0   : > { %1111 = vrot.lane.b32.xlu0 %v2898_v20, %s2425_s22  ;;  %v2940_v55 = vld [vmem:[#allocation2 + $0x8] sm:$0xff] }
 0x1c1   : > { %1113 = vrot.lane.b32.xlu1 %v2902_v32, %s2425_s22 }
 0x1c4   : > { %1121 = vrot.lane.b32.xlu0 %v2898_v20, %s2426_s23 }
 0x1c5   : > { %1123 = vrot.lane.b32.xlu1 %v2902_v32, %s2426_s23 }
 0x1c8   : > { %1131 = vrot.lane.b32.xlu0 %v2898_v20, %s2427_s24 }
 0x1c9   : > { %1133 = vrot.lane.b32.xlu1 %v2902_v32, %s2427_s24 }
 0x1cc   : > { %1443 = vrot.lane.b32.xlu0 %v2938_v54, %s2421_s18 }
 0x1cd   : > { %1445 = vrot.lane.b32.xlu1 %v2940_v55, %s2421_s18 }
 0x1d0   : > { %1453 = vrot.lane.b32.xlu0 %v2938_v54, %s2420_s17 }
 0x1d1   : > { %1455 = vrot.lane.b32.xlu1 %v2940_v55, %s2420_s17  ;;  %s525_s17 = scalar_lea.vmem %s3210_s9, %s2512_s27 }
 0x1d4   : > { %1463 = vrot.lane.b32.xlu0 %v2938_v54, %s2422_s19 }
 0x1d5   : > { %1465 = vrot.lane.b32.xlu1 %v2940_v55, %s2422_s19  ;;  %s540_s19 = scalar_lea.vmem %s3213_s12, %s2512_s27 }
 0x1d6   : > { %1049 = vst [vmem:[%s540_s19] sm:$0xff] %v1047_v14 }
 0x1d8   : > { %1473 = vrot.lane.b32.xlu0 %v2938_v54, %s2423_s20 }
 0x1d9   : > { %1475 = vrot.lane.b32.xlu1 %v2940_v55, %s2423_s20  ;;  %s535_s20 = scalar_lea.vmem %s3212_s11, %s2512_s27 }
 0x1dc   : > { %1485 = vrot.lane.b32.xlu0 %v2938_v54, %s2424_s21 }
 0x1dd   : > { %1487 = vrot.lane.b32.xlu1 %v2940_v55, %s2424_s21 }
 0x1e0   : > { %1495 = vrot.lane.b32.xlu0 %v2938_v54, %s2425_s22 }
 0x1e1   : > { %1497 = vrot.lane.b32.xlu1 %v2940_v55, %s2425_s22 }
 0x1e4   : > { %1505 = vrot.lane.b32.xlu0 %v2938_v54, %s2426_s23 }
 0x1e5   : > { %1507 = vrot.lane.b32.xlu1 %v2940_v55, %s2426_s23  ;;  %s545_s23 = scalar_lea.vmem %s3214_s13, %s2512_s27 }
 0x1e8   : > { %1515 = vrot.lane.b32.xlu0 %v2938_v54, %s2427_s24 }
 0x1e9   : > { %1517 = vrot.lane.b32.xlu1 %v2940_v55, %s2427_s24 }
 0x21e   : > { %v1060_v21 = vpop.permute.xlu0 %1059 }
 0x21f   : > { %v1062_v22 = vpop.permute.xlu1 %1061 }
 0x220   : > { %v1063_v25 = vsel %vm590_vm3, %v1060_v21, %v1062_v22  ;;  %v1064_v26 = vsel %vm590_vm3, %v1062_v22, %v1060_v21 }
 0x221   : > { %v1065_v48 = vmul.f32 %v1064_v26, %v2637_v35  ;;  %v1066_v50 = vmul.f32 %v1063_v25, %v2639_v36 }
 0x222   : > { %v1070_v29 = vpop.permute.xlu0 %1069 }
 0x223   : > { %v1072_v44 = vpop.permute.xlu1 %1071 }
 0x224   : > { %v1073_v8 = vsel %vm612_vm0, %v1070_v29, %v1072_v44  ;;  %v1074_v47 = vsel %vm612_vm0, %v1072_v44, %v1070_v29 }
 0x225   : > { %v1075_v52 = vmul.f32 %v1074_v47, %v2615_v27  ;;  %v1076_v6 = vmul.f32 %v1073_v8, %v2625_v31 }
 0x226   : > { %v1080_v53 = vpop.permute.xlu0 %1079 }
 0x227   : > { %v2990_v5 = vpack.c.bf16 %v1075_v52, %v1065_v48  ;;  %v1082_v57 = vpop.permute.xlu1 %1081  ;;  %v2992_v58 = vpack.c.bf16 %v1076_v6, %v1066_v50 }
 0x228   : > { %v1083_v4 = vsel %vm634_vm2, %v1080_v53, %v1082_v57  ;;  %v1084_v13 = vsel %vm634_vm2, %v1082_v57, %v1080_v53 }
 0x229   : > { %2235 = vmatprep.subr.bf16.mxu0 %v2992_v58  ;;  %v1085_v26 = vmul.f32 %v1084_v13, %v2644_v38  ;;  %v1086_v29 = vmul.f32 %v1083_v4, %v2646_v39 }
 0x22a   : > { %2237 = vmatpush1.bf16.msra.mxu0 %v2990_v5  ;;  %v1090_v14 = vpop.permute.xlu0 %1089 }
 0x22b   : > { %v1092_v21 = vpop.permute.xlu1 %1091 }
 0x22c   : > { %v1093_v22 = vsel %vm656_vm1, %v1090_v14, %v1092_v21  ;;  %v1094_v25 = vsel %vm656_vm1, %v1092_v21, %v1090_v14 }
 0x22d   : > { %v1095_v44 = vmul.f32 %v1094_v25, %v2652_v42  ;;  %v1096_v8 = vmul.f32 %v1093_v22, %v2633_v34 }
 0x22e   : > { %v1102_v47 = vpop.permute.xlu0 %1101 }
 0x22f   : > { %v3008_v48 = vpack.c.bf16 %v1095_v44, %v1085_v26  ;;  %v1104_v50 = vpop.permute.xlu1 %1103  ;;  %v3010_v52 = vpack.c.bf16 %v1096_v8, %v1086_v29 }
 0x230   : > { %v1105_v6 = vsel %vm680_vm4, %v1102_v47, %v1104_v50  ;;  %v1106_v53 = vsel %vm680_vm4, %v1104_v50, %v1102_v47 }
 0x231   : > { %v1107_v57 = vmul.f32 %v1105_v6, %v2687_v1  ;;  %v1108_v4 = vmul.f32 %v1106_v53, %v2655_v43  ;;  %2239 = vmatprep.subr.bf16.mxu0 %v3010_v52 }
 0x232   : > { %2241 = vmatpush1.bf16.msra.mxu0 %v3008_v48  ;;  %v1112_v13 = vpop.permute.xlu0 %1111 }
 0x233   : > { %v3021_v14 = vpack.c.bf16 %v1107_v57, %v2898_v20  ;;  %v1114_v21 = vpop.permute.xlu1 %1113  ;;  %v3024_v22 = vpack.c.bf16 %v1108_v4, %v2902_v32 }
 0x234   : > { %v1115_v25 = vsel %vm702_vm6, %v1112_v13, %v1114_v21  ;;  %v1116_v26 = vsel %vm702_vm6, %v1114_v21, %v1112_v13 }
 0x235   : > { %2243 = vmatprep.subr.bf16.mxu0 %v3024_v22  ;;  %v1117_v32 = vmul.f32 %v1115_v25, %v2729_v33  ;;  %v1118_v47 = vmul.f32 %v1116_v26, %v2703_v12 }
 0x236   : > { %2245 = vmatpush1.bf16.msra.mxu0 %v3021_v14  ;;  %v1122_v29 = vpop.permute.xlu0 %1121 }
 0x237   : > { %v1124_v44 = vpop.permute.xlu1 %1123 }
 0x238   : > { %v1125_v20 = vsel %vm724_vm5, %v1122_v29, %v1124_v44  ;;  %v1126_v8 = vsel %vm724_vm5, %v1124_v44, %v1122_v29 }
 0x239   : > { %v1127_v50 = vmul.f32 %v1125_v20, %v2714_v15  ;;  %v1128_v6 = vmul.f32 %v1126_v8, %v2690_v2 }
 0x23a   : > { %v1132_v53 = vpop.permute.xlu0 %1131 }
 0x23b   : > { %v3040_v57 = vpack.c.bf16 %v1127_v50, %v1117_v32  ;;  %v1134_v4 = vpop.permute.xlu1 %1133  ;;  %v3042_v13 = vpack.c.bf16 %v1128_v6, %v1118_v47 }
 0x23c   : > { %v1135_v21 = vsel %vm746_vm7, %v1132_v53, %v1134_v4  ;;  %v1136_v29 = vsel %vm746_vm7, %v1134_v4, %v1132_v53 }
 0x23d   : > { %v1137_v25 = vmul.f32 %v1135_v21, %v2745_v46  ;;  %v1138_v26 = vmul.f32 %v1136_v29, %v2719_v17  ;;  %2247 = vmatprep.subr.bf16.mxu0 %v3042_v13 }
 0x23e   : > { %2249 = vmatpush1.bf16.msra.mxu0 %v3040_v57  ;;  %v1444_v44 = vpop.permute.xlu0 %1443 }
 0x23f   : > { %v3053_v20 = vpack.c.bf16 %v3215_v7, %v1138_v26  ;;  %v3056_v8 = vpack.c.bf16 %v3215_v7, %v1137_v25  ;;  %v1446_v32 = vpop.permute.xlu1 %1445 }
 0x240   : > { %v1447_v47 = vsel %vm590_vm3, %v1444_v44, %v1446_v32  ;;  %v1448_v50 = vsel %vm590_vm3, %v1446_v32, %v1444_v44 }
 0x241   : > { %2252 = vmatprep.subr.msk.bf16.mxu0 %vm2779_vm10, %v3053_v20  ;;  %v1449_v29 = vmul.f32 %v1448_v50, %v2637_v35  ;;  %v1450_v25 = vmul.f32 %v1447_v47, %v2639_v36 }
 0x242   : > { %2255 = vmatpush1.bf16.msk.msra.mxu0 %vm2779_vm10, %v3056_v8  ;;  %v1454_v6 = vpop.permute.xlu0 %1453 }
 0x243   : > { %v1456_v53 = vpop.permute.xlu1 %1455  ;;  %2279 = vmatprep.subr.bf16.mxu0 %v2682_v60 }
 0x244   : > { %v1457_v4 = vsel %vm612_vm0, %v1454_v6, %v1456_v53  ;;  %v1458_v21 = vsel %vm612_vm0, %v1456_v53, %v1454_v6 }
 0x245   : > { %v1459_v26 = vmul.f32 %v1458_v21, %v2615_v27  ;;  %v1460_v44 = vmul.f32 %v1457_v4, %v2625_v31  ;;  %2156 = vmatmul.mubr.msk.f32.vlgmr.msra.gmra.mrb[2].mxu0 %vm895_vm11, %v2887_v37 }
 0x246   : > { %2281 = vmatpush1.bf16.msra.mxu0 %v2684_v61  ;;  %v1464_v60 = vpop.permute.xlu0 %1463  ;;  %1411 = vmatprep.mubr.f32.mxu0 %v2419_v0 }
 0x247   : > { %v2302_v32 = vpack.c.bf16 %v1459_v26, %v1449_v29  ;;  %v1466_v7 = vpop.permute.xlu1 %1465  ;;  %2283 = vmatprep.subr.bf16.mxu0 %v2701_v11  ;;  %v2300_v6 = vpack.c.bf16 %v1460_v44, %v1450_v25 }
 0x248   : > { %v1467_v35 = vsel %vm634_vm2, %v1464_v60, %v1466_v7  ;;  %v1468_v27 = vsel %vm634_vm2, %v1466_v7, %v1464_v60 }
 0x249   : > { %2301 = vmatprep.subr.bf16.mxu1 %v2300_v6  ;;  %v1469_v47 = vmul.f32 %v1468_v27, %v2644_v38  ;;  %v1470_v50 = vmul.f32 %v1467_v35, %v2646_v39 }
 0x24a   : > { %2285 = vmatpush1.bf16.msra.mxu0 %v2717_v16  ;;  %2303 = vmatpush1.bf16.msra.mxu1 %v2302_v32  ;;  %v1474_v31 = vpop.permute.xlu0 %1473 }
 0x24b   : > { %v1476_v36 = vpop.permute.xlu1 %1475  ;;  %2287 = vmatprep.subr.bf16.mxu0 %v2736_v40 }
 0x24c   : > { %v1477_v61 = vsel %vm656_vm1, %v1474_v31, %v1476_v36  ;;  %v1478_v11 = vsel %vm656_vm1, %v1476_v36, %v1474_v31 }
 0x24d   : > { %v1479_v53 = vmul.f32 %v1478_v11, %v2652_v42  ;;  %v1480_v7 = vmul.f32 %v1477_v61, %v2633_v34 }
 0x24e   : > { %2289 = vmatpush1.bf16.msra.mxu0 %v2755_v49  ;;  %v1486_v16 = vpop.permute.xlu0 %1485 }
 0x24f   : > { %v2306_v4 = vpack.c.bf16 %v1479_v53, %v1469_v47  ;;  %v1488_v21 = vpop.permute.xlu1 %1487  ;;  %2291 = vmatprep.subr.bf16.mxu0 %v2762_v51  ;;  %v2304_v40 = vpack.c.bf16 %v1480_v7, %v1470_v50 }
 0x250   : > { %v1489_v29 = vsel %vm680_vm4, %v1486_v16, %v1488_v21  ;;  %v1490_v38 = vsel %vm680_vm4, %v1488_v21, %v1486_v16 }
 0x251   : > { %v1491_v39 = vmul.f32 %v1489_v29, %v2687_v1  ;;  %v1492_v42 = vmul.f32 %v1490_v38, %v2655_v43  ;;  %2305 = vmatprep.subr.bf16.mxu1 %v2304_v40 }
 0x252   : > { %2293 = vmatpush1.bf16.msra.mxu0 %v2783_v3  ;;  %2307 = vmatpush1.bf16.msra.mxu1 %v2306_v4  ;;  %v1496_v34 = vpop.permute.xlu0 %1495 }
 0x253   : > { %v2310_v49 = vpack.c.bf16 %v1491_v39, %v2938_v54  ;;  %v1498_v25 = vpop.permute.xlu1 %1497  ;;  %2296 = vmatprep.subr.msk.bf16.mxu0 %vm2779_vm10, %v2770_v56  ;;  %v2308_v51 = vpack.c.bf16 %v1492_v42, %v2940_v55 }
 0x254   : > { %v1499_v1 = vsel %vm702_vm6, %v1496_v34, %v1498_v25  ;;  %v1500_v43 = vsel %vm702_vm6, %v1498_v25, %v1496_v34 }
 0x255   : > { %2309 = vmatprep.subr.bf16.mxu1 %v2308_v51  ;;  %v1501_v26 = vmul.f32 %v1499_v1, %v2729_v33  ;;  %v1502_v44 = vmul.f32 %v1500_v43, %v2703_v12 }
 0x256   : > { %2299 = vmatpush1.bf16.msk.msra.mxu0 %vm2779_vm10, %v2791_v10  ;;  %2311 = vmatpush1.bf16.msra.mxu1 %v2310_v49  ;;  %v1506_v3 = vpop.permute.xlu0 %1505 }
 0x257   : > { %v1508_v54 = vpop.permute.xlu1 %1507  ;;  %2323 = vmatprep.subr.bf16.mxu0 %v2992_v58 }
 0x258   : > { %v1509_v56 = vsel %vm724_vm5, %v1506_v3, %v1508_v54  ;;  %v1510_v55 = vsel %vm724_vm5, %v1508_v54, %v1506_v3 }
 0x259   : > { %v1511_v60 = vmul.f32 %v1509_v56, %v2714_v15  ;;  %v1512_v32 = vmul.f32 %v1510_v55, %v2690_v2  ;;  %2158 = vmatmul.mubr.msk.f32.vlgmr.msra.gmra.mrb[4].mxu0 %vm895_vm11, %v2887_v37  ;;  %v3219_v37 = vmov 1.0  }
 0x25a   : > { %2325 = vmatpush1.bf16.msra.mxu0 %v2990_v5  ;;  %v1516_v10 = vpop.permute.xlu0 %1515  ;;  %1735 = vmatprep.mubr.f32.mxu0 %v2419_v0 }
 0x25b   : > { %v2314_v58 = vpack.c.bf16 %v1511_v60, %v1501_v26  ;;  %v1518_v6 = vpop.permute.xlu1 %1517  ;;  %2327 = vmatprep.subr.bf16.mxu0 %v3010_v52  ;;  %v2312_v35 = vpack.c.bf16 %v1512_v32, %v1502_v44 }
 0x25c   : > { %v1519_v12 = vsel %vm746_vm7, %v1516_v10, %v1518_v6  ;;  %v1520_v15 = vsel %vm746_vm7, %v1518_v6, %v1516_v10 }
 0x25d   : > { %v1521_v2 = vmul.f32 %v1519_v12, %v2745_v46  ;;  %v1522_v33 = vmul.f32 %v1520_v15, %v2719_v17  ;;  %2313 = vmatprep.subr.bf16.mxu1 %v2312_v35  ;;  %v1627_v17 = vld [vmem:[%s3205_s4] sm:$0x7] }
 0x25e   : > { %2315 = vmatpush1.bf16.msra.mxu1 %v2314_v58  ;;  %2329 = vmatpush1.bf16.msra.mxu0 %v3008_v48 }
 0x25f   : > { %v2316_v5 = vpack.c.bf16 %v3219_v37, %v1522_v33  ;;  %v2319_v27 = vpack.c.bf16 %v3219_v37, %v1521_v2  ;;  %2331 = vmatprep.subr.bf16.mxu0 %v3024_v22 }
 0x261   : > { %2318 = vmatprep.subr.msk.bf16.mxu1 %vm2779_vm10, %v2316_v5 }
 0x262   : > { %2321 = vmatpush1.bf16.msk.msra.mxu1 %vm2779_vm10, %v2319_v27  ;;  %2333 = vmatpush1.bf16.msra.mxu0 %v3021_v14 }
 0x263   : > { %2335 = vmatprep.subr.bf16.mxu0 %v3042_v13  ;;  %2345 = vmatprep.subr.bf16.mxu1 %v2773_v59 }
 0x265   : > { %2159 = vmatmul.mubr.msk.f32.vlgmr.msra.gmra.mrb[4].mxu1 %vm895_vm11, %v1525_v19 }
 0x266   : > { %2337 = vmatpush1.bf16.msra.mxu0 %v3040_v57  ;;  %2347 = vmatpush1.bf16.msra.mxu1 %v2775_v62 }
 0x267   : > { %2340 = vmatprep.subr.msk.bf16.mxu0 %vm2779_vm10, %v3053_v20  ;;  %2349 = vmatprep.subr.bf16.mxu1 %v2813_v41 }
 0x268   : > { %1806 = vmatprep.mubr.f32.mxu1 %v2419_v0 }
 0x26a   : > { %2343 = vmatpush1.bf16.msk.msra.mxu0 %vm2779_vm10, %v3056_v8  ;;  %2351 = vmatpush1.bf16.msra.mxu1 %v2815_v45 }
 0x26b   : > { %2353 = vmatprep.subr.bf16.mxu1 %v2829_v30 }
 0x26d   : > { %2160 = vmatmul.mubr.msk.f32.vlgmr.msra.gmra.mrb[6].mxu0 %vm895_vm11, %v1627_v17 }
 0x26e   : > { %2355 = vmatpush1.bf16.msra.mxu1 %v2832_v23 }
 0x26f   : > { %2357 = vmatprep.subr.bf16.mxu1 %v2852_v9 }
 0x272   : > { %2359 = vmatpush1.bf16.msra.mxu1 %v2854_v18 }
 0x273   : > { %2362 = vmatprep.subr.msk.bf16.mxu1 %vm2779_vm10, %v2867_v28 }
 0x276   : > { %2365 = vmatpush1.bf16.msk.msra.mxu1 %vm2779_vm10, %v2870_v24 }
 0x279   : > { %2161 = vmatmul.mubr.msk.f32.vlgmr.msra.gmra.mrb[6].mxu1 %vm895_vm11, %v1627_v17 }
 0x318   : > { %v1271_v0 = vpop.f32.mrb[2].mxu0 }
 0x319   : > { %2399 = vtanh.f32 %v1271_v0  ;;  %v1273_v46 = vpop.f32.mrb[3].mxu0 }
 0x31a   : > { %2401 = vtanh.f32 %v1273_v46 }
 0x323   : > { %v2400_v59 = vpop.eup %2399 }
 0x324   : > { %v2402_v62 = vpop.eup %2401 }
 0x325   : > { %v1426_v41 = vcombine.low %v2400_v59, %v2402_v62 }
 0x327   : > { %1428 = vst [vmem:[%s515_s16] sm:$0xff] %v1426_v41 }
 0x32c   : > { %v1413_v45 = vpop.f32.mrb[4].mxu0 }
 0x32d   : > { %2403 = vtanh.f32 %v1413_v45  ;;  %v1415_v63 = vpop.f32.mrb[5].mxu0 }
 0x32e   : > { %2405 = vtanh.f32 %v1415_v63 }
 0x337   : > { %v2404_v30 = vpop.eup %2403 }
 0x338   : > { %v2406_v23 = vpop.eup %2405  ;;  %v1615_v9 = vpop.f32.mrb[4].mxu1 }
 0x339   : > { %2407 = vtanh.f32 %v1615_v9  ;;  %v1436_v18 = vcombine.low %v2404_v30, %v2406_v23  ;;  %v1617_v28 = vpop.f32.mrb[5].mxu1 }
 0x33a   : > { %2409 = vtanh.f32 %v1617_v28 }
 0x33b   : > { %1438 = vst [vmem:[%s520_s29] sm:$0xff] %v1436_v18 }
 0x340   : > { %v1737_v24 = vpop.f32.mrb[6].mxu0 }
 0x341   : > { %v1739_v48 = vpop.f32.mrb[7].mxu0 }
 0x342   : > { %v1815_v52 = vcombine.low %v1737_v24, %v1739_v48 }
 0x343   : > { %v2408_v14 = vpop.eup %2407 }
 0x344   : > { %v2410_v22 = vpop.eup %2409  ;;  %1817 = vst [vmem:[%s525_s17] sm:$0x77] %v1815_v52 }
 0x345   : > { %v1624_v57 = vcombine.low %v2408_v14, %v2410_v22 }
 0x347   : > { %1626 = vst [vmem:[%s535_s20] sm:$0xff] %v1624_v57 }
 0x34c   : > { %v1808_v13 = vpop.f32.mrb[6].mxu1 }
 0x34d   : > { %v1810_v20 = vpop.f32.mrb[7].mxu1 }
 0x34e   : > { %v1820_v8 = vcombine.low %v1808_v13, %v1810_v20 }
 0x350   : > { %1822 = vst [vmem:[%s545_s23] sm:$0x77] %v1820_v8 }
 0x351 PF: > { %s24_s25 = sadd.s32 1, %s2417_s25  }
 0x352   : > { %p21_p4 = scmp.ge.s32.totalorder %s24_s25, 4  }
 0x354   :  { %23 = sbr.rel (!%p21_p4) target bundleno = 1 (0x1), region = 168 }

</bundles_post_ra>
